<compile_context>
chip_gen: v6e
topology: v6e:2x2x1
jax: 0.10.0
libtpu: 0.0.40
codegen_flags: <defaults>
</compile_context>

<pallas_src>
import math
import numpy as np
import jax
import jax.numpy as jnp
from jax.experimental import pallas as pl
from jax.experimental.pallas import tpu as pltpu


# ----------------------------------------------------------------------------
# Beta schedules (host-side, float64 like the torch reference, cast to f32)
# ----------------------------------------------------------------------------
def cosine_beta_schedule(timesteps, s=0.008):
    steps = timesteps + 1
    x = np.linspace(0, timesteps, steps, dtype=np.float64)
    alphas_cumprod = np.cos((x / timesteps + s) / (1 + s) * math.pi * 0.5) ** 2
    alphas_cumprod = alphas_cumprod / alphas_cumprod[0]
    betas = 1.0 - alphas_cumprod[1:] / alphas_cumprod[:-1]
    return np.clip(betas, 0.0, 0.999)


def linear_beta_schedule(timesteps):
    scale = 1000.0 / timesteps
    beta_start, beta_end = scale * 0.0001, scale * 0.02
    return np.linspace(beta_start, beta_end, timesteps, dtype=np.float64)


def make_diffusion_buffers(timesteps, beta_schedule="cosine"):
    if beta_schedule == "linear":
        betas = linear_beta_schedule(timesteps)
    elif beta_schedule == "cosine":
        betas = cosine_beta_schedule(timesteps)
    else:
        raise ValueError(f"unknown beta schedule {beta_schedule}")
    alphas = 1.0 - betas
    alphas_cumprod = np.cumprod(alphas, axis=0)
    alphas_cumprod_prev = np.concatenate([[1.0], alphas_cumprod[:-1]])
    posterior_variance = betas * (1.0 - alphas_cumprod_prev) / (1.0 - alphas_cumprod)
    buf = dict(
        betas=betas,
        alphas_cumprod=alphas_cumprod,
        alphas_cumprod_prev=alphas_cumprod_prev,
        sqrt_alphas_cumprod=np.sqrt(alphas_cumprod),
        sqrt_one_minus_alphas_cumprod=np.sqrt(1.0 - alphas_cumprod),
        log_one_minus_alphas_cumprod=np.log(1.0 - alphas_cumprod),
        sqrt_recip_alphas_cumprod=np.sqrt(1.0 / alphas_cumprod),
        sqrt_recipm1_alphas_cumprod=np.sqrt(1.0 / alphas_cumprod - 1.0),
        posterior_variance=posterior_variance,
        posterior_log_variance_clipped=np.log(np.clip(posterior_variance, 1e-20, None)),
        posterior_mean_coef1=betas * np.sqrt(alphas_cumprod_prev) / (1.0 - alphas_cumprod),
        posterior_mean_coef2=(1.0 - alphas_cumprod_prev) * np.sqrt(alphas) / (1.0 - alphas_cumprod),
    )
    return {k: jnp.asarray(v, dtype=jnp.float32) for k, v in buf.items()}


# ----------------------------------------------------------------------------
# Fused Pallas kernel: q_sample + MLP denoiser + squared-error partial sums
# ----------------------------------------------------------------------------
def diffusion_loss_kernel(x0_ref, noise_ref, cond_ref, w1_ref, bt_ref, bc_ref,
                          w2_ref, psum_ref):
    x0 = x0_ref[...]             # [TB, D]  f32
    noise = noise_ref[...]       # [TB, D]  f32
    cond = cond_ref[...]         # [TB, 8]  f32: lanes 0..3 = coef_a, coef_b, t/T, label

    coef_a = cond[:, 0:1]
    coef_b = cond[:, 1:2]
    tf = cond[:, 2:3]
    cf = cond[:, 3:4]

    # q_sample: per-row scalar coefficients broadcast over D (f32 on the VPU)
    x = coef_a * x0 + coef_b * noise                                    # [TB, D]

    # synthetic denoiser MLP: bf16 MXU operands, f32 accumulation
    h = jnp.dot(x.astype(jnp.bfloat16), w1_ref[...],
                preferred_element_type=jnp.float32)                     # [TB, H]
    bias = tf * bt_ref[...] + cf * bc_ref[...]                          # one [TB, H] temp
    h = jnp.maximum(h + bias, 0.0)
    pred = jnp.dot(h.astype(jnp.bfloat16), w2_ref[...],
                   preferred_element_type=jnp.float32)                  # [TB, D]

    # squared error, sublane-reduced TB -> 8 rows (lane/sublane-dense writeback)
    diff = pred - noise
    diff2 = diff * diff
    tb, _ = diff2.shape
    acc = diff2[0:8, :]
    for r in range(1, tb // 8):                                         # static unroll
        acc = acc + diff2[r * 8:(r + 1) * 8, :]
    psum_ref[...] = acc


def gaussian_diffusion_forward(img, classes, buffers, model_params,
                               num_timesteps, key, *, batch_tile=256):
    """Mirrors GaussianDiffusion.forward -> p_losses.  Returns (scalar loss, aux)."""
    B, D = img.shape
    H = model_params["w1"].shape[1]
    batch_tile = min(batch_tile, B)
    assert batch_tile % 8 == 0 and B % batch_tile == 0, "batch tile must be 8-aligned and divide B"
    # lane alignment: multiples of 128 required; prefer multiples of 256 on v6e/v7x
    assert D % 128 == 0 and H % 128 == 0, "D/H must be lane-aligned (multiples of 128)"
    num_tiles = B // batch_tile

    k_t, k_noise, k_pas = jax.random.split(key, 3)
    # t ~ randint(0, T, (B,)),  noise ~ N(0, 1)
    t = jax.random.randint(k_t, (B,), 0, num_timesteps)
    noise = jax.random.normal(k_noise, img.shape, dtype=img.dtype)
    # label dropout: ONE scalar draw for the whole batch (matches torch `random.random()`)
    pas = jax.random.uniform(k_pas, ())
    label = jnp.where(pas < 0.1, jnp.zeros_like(classes) - 10000, classes)

    # extract(a, t, shape) gathers + conditioning consolidated into one small [B, 8] operand
    coef_a = buffers["sqrt_alphas_cumprod"][t]
    coef_b = buffers["sqrt_one_minus_alphas_cumprod"][t]
    tf = t.astype(jnp.float32) / float(num_timesteps)
    cf = label.astype(jnp.float32)
    cond = jnp.zeros((B, 8), jnp.float32)
    cond = cond.at[:, 0].set(coef_a).at[:, 1].set(coef_b)
    cond = cond.at[:, 2].set(tf).at[:, 3].set(cf)

    w1, bt, bc, w2 = (model_params["w1"], model_params["bt"],
                      model_params["bc"], model_params["w2"])

    # cost estimate (advisory)
    flops = 4 * B * D * H + 8 * B * D + 4 * B * H
    bytes_accessed = (2 * B * D * 4                       # img + noise stream
                      + B * 8 * 4                         # conditioning stream
                      + 2 * D * H * w1.dtype.itemsize     # resident bf16 weights
                      + 2 * H * 4                         # bt, bc
                      + num_tiles * 8 * D * 4)            # reduced partial-sum output

    # VMEM budget derived from actual footprint (double-buffered streams +
    # double-buffered resident weights + f32 intermediates), capped for v7x.
    stream_bytes = 2 * (2 * batch_tile * D * 4 + batch_tile * 8 * 4 + 8 * D * 4)
    weight_bytes = 2 * (D * H * w1.dtype.itemsize + H * D * w2.dtype.itemsize + 2 * H * 4)
    interm_bytes = 6 * batch_tile * max(D, H) * 4
    vmem_limit = int(min(64 * 1024 * 1024,
                         max(16 * 1024 * 1024,
                             stream_bytes + weight_bytes + interm_bytes)))

    grid_spec = pltpu.PrefetchScalarGridSpec(
        num_scalar_prefetch=0,
        grid=(num_tiles,),
        in_specs=[
            pl.BlockSpec((batch_tile, D), lambda i: (i, 0)),  # img tile (streamed)
            pl.BlockSpec((batch_tile, D), lambda i: (i, 0)),  # noise tile (streamed)
            pl.BlockSpec((batch_tile, 8), lambda i: (i, 0)),  # conditioning tile (small)
            pl.BlockSpec((D, H), lambda i: (0, 0)),           # w1 (VMEM-resident)
            pl.BlockSpec((1, H), lambda i: (0, 0)),           # bt (VMEM-resident)
            pl.BlockSpec((1, H), lambda i: (0, 0)),           # bc (VMEM-resident)
            pl.BlockSpec((H, D), lambda i: (0, 0)),           # w2 (VMEM-resident)
        ],
        out_specs=pl.BlockSpec((8, D), lambda i: (i, 0)),     # reduced per-tile partial sums
    )

    partial = pl.pallas_call(
        diffusion_loss_kernel,
        out_shape=jax.ShapeDtypeStruct((num_tiles * 8, D), jnp.float32),
        grid_spec=grid_spec,
        compiler_params=pltpu.CompilerParams(
            dimension_semantics=("parallel",),
            vmem_limit_bytes=vmem_limit),
        cost_estimate=pl.CostEstimate(
            flops=flops, transcendentals=0, bytes_accessed=bytes_accessed),
    )(img, noise, cond, w1, bt, bc, w2)

    loss = jnp.sum(partial) * (1.0 / float(B * D))
    return loss, (t, noise, label, cond)


# ----------------------------------------------------------------------------
# Pure-JAX references (outside Pallas) for correctness checks
# ----------------------------------------------------------------------------
def reference_loss_bf16(img, noise, cond, model_params):
    """Mirrors the kernel math (bf16 MXU operands, f32 accumulation)."""
    coef_a, coef_b = cond[:, 0:1], cond[:, 1:2]
    tf, cf = cond[:, 2:3], cond[:, 3:4]
    x = coef_a * img + coef_b * noise
    h = jnp.dot(x.astype(jnp.bfloat16), model_params["w1"],
                preferred_element_type=jnp.float32)
    h = jnp.maximum(h + tf * model_params["bt"] + cf * model_params["bc"], 0.0)
    pred = jnp.dot(h.astype(jnp.bfloat16), model_params["w2"],
                   preferred_element_type=jnp.float32)
    return jnp.mean((pred - noise) ** 2)


def reference_loss_f32(img, noise, cond, model_params):
    coef_a, coef_b = cond[:, 0:1], cond[:, 1:2]
    tf, cf = cond[:, 2:3], cond[:, 3:4]
    x = coef_a * img + coef_b * noise
    w1 = model_params["w1"].astype(jnp.float32)
    w2 = model_params["w2"].astype(jnp.float32)
    h = x @ w1 + tf * model_params["bt"] + cf * model_params["bc"]
    h = jnp.maximum(h, 0.0)
    pred = h @ w2
    return jnp.mean((pred - noise) ** 2)


if __name__ == "__main__":
    # Small but vreg/MXU-aligned shapes: batch mult of 8, image_size/hidden mult of 256
    # (fills the 256-wide MXU on v6e/v7x; also fine on v5e's 128x128 MXU).
    # batch_tile=256 per perf review; num_tiles=2 keeps both v7x TensorCores busy.
    B, D, H, T = 512, 256, 256, 64   # batch, image_size, hidden, timesteps
    BATCH_TILE = 256

    key = jax.random.PRNGKey(0)
    k_img, k_cls, k_w1, k_bt, k_bc, k_w2, k_fwd = jax.random.split(key, 7)

    img = jax.random.normal(k_img, (B, D), dtype=jnp.float32)
    classes = jax.random.randint(k_cls, (B,), 0, 10)

    # deterministic synthetic denoiser params; matmul weights stored bf16 for the MXU
    model_params = dict(
        w1=(0.1 * jax.random.normal(k_w1, (D, H), dtype=jnp.float32)).astype(jnp.bfloat16),
        bt=jax.random.normal(k_bt, (1, H), dtype=jnp.float32),
        bc=0.01 * jax.random.normal(k_bc, (1, H), dtype=jnp.float32),
        w2=(0.1 * jax.random.normal(k_w2, (H, D), dtype=jnp.float32)).astype(jnp.bfloat16),
    )

    buffers = make_diffusion_buffers(T, beta_schedule="cosine")

    loss, (t, noise, label, cond) = gaussian_diffusion_forward(
        img, classes, buffers, model_params, T, k_fwd, batch_tile=BATCH_TILE)
    loss = jax.block_until_ready(loss)
    assert jnp.isfinite(loss)

    # Tight check against a reference that uses the same bf16/f32 mixed precision.
    ref_bf16 = reference_loss_bf16(img, noise, cond, model_params)
    rel_err = abs(float(loss) - float(ref_bf16)) / (1.0 + abs(float(ref_bf16)))
    assert rel_err < 5e-3, (float(loss), float(ref_bf16), rel_err)

    # Loose sanity check against the full-f32 math (bounds bf16 rounding error).
    ref_f32 = reference_loss_f32(img, noise, cond, model_params)
    rel_err_f32 = abs(float(loss) - float(ref_f32)) / (1.0 + abs(float(ref_f32)))
    assert rel_err_f32 < 6e-2, (float(loss), float(ref_f32), rel_err_f32)

    print("KERNEL_OK")
</pallas_src>

<mosaic_0001>
module attributes {stable_mosaic.version = 11 : i64} {
  func.func @diffusion_loss_kernel(%arg0: i32, %arg1: memref<256x256xf32, #tpu.memory_space<vmem>>, %arg2: memref<256x256xf32, #tpu.memory_space<vmem>>, %arg3: memref<256x8xf32, #tpu.memory_space<vmem>>, %arg4: memref<256x256xbf16, #tpu.memory_space<vmem>>, %arg5: memref<1x256xf32, #tpu.memory_space<vmem>>, %arg6: memref<1x256xf32, #tpu.memory_space<vmem>>, %arg7: memref<256x256xbf16, #tpu.memory_space<vmem>>, %arg8: memref<8x256xf32, #tpu.memory_space<vmem>>) attributes {dimension_semantics = [#tpu.dimension_semantics<parallel>], iteration_bounds = array<i64: 2>, scalar_prefetch = 0 : i64, scratch_operands = 0 : i64, tpu.core_type = #tpu.core_type<tc>, window_params = [{transform_indices = @transform_0, window_bounds = array<i64: 256, 256>}, {transform_indices = @transform_1, window_bounds = array<i64: 256, 256>}, {transform_indices = @transform_2, window_bounds = array<i64: 256, 8>}, {pipeline_mode = #tpu.pipeline_mode<synchronous>, transform_indices = @transform_3, window_bounds = array<i64: 256, 256>}, {pipeline_mode = #tpu.pipeline_mode<synchronous>, transform_indices = @transform_4, window_bounds = array<i64: 1, 256>}, {pipeline_mode = #tpu.pipeline_mode<synchronous>, transform_indices = @transform_5, window_bounds = array<i64: 1, 256>}, {pipeline_mode = #tpu.pipeline_mode<synchronous>, transform_indices = @transform_6, window_bounds = array<i64: 256, 256>}, {transform_indices = @transform_7, window_bounds = array<i64: 8, 256>}]} {
    %c0 = arith.constant 0 : index
    %c0_0 = arith.constant 0 : index
    %0 = vector.load %arg1[%c0, %c0_0] : memref<256x256xf32, #tpu.memory_space<vmem>>, vector<256x256xf32>
    %c0_1 = arith.constant 0 : index
    %c0_2 = arith.constant 0 : index
    %1 = vector.load %arg2[%c0_1, %c0_2] : memref<256x256xf32, #tpu.memory_space<vmem>>, vector<256x256xf32>
    %c0_3 = arith.constant 0 : index
    %c0_4 = arith.constant 0 : index
    %2 = vector.load %arg3[%c0_3, %c0_4] : memref<256x8xf32, #tpu.memory_space<vmem>>, vector<256x8xf32>
    %3 = vector.extract_strided_slice %2 {offsets = [0, 0], sizes = [256, 1], strides = [1, 1]} : vector<256x8xf32> to vector<256x1xf32>
    %4 = vector.extract_strided_slice %2 {offsets = [0, 1], sizes = [256, 1], strides = [1, 1]} : vector<256x8xf32> to vector<256x1xf32>
    %5 = vector.extract_strided_slice %2 {offsets = [0, 2], sizes = [256, 1], strides = [1, 1]} : vector<256x8xf32> to vector<256x1xf32>
    %6 = vector.extract_strided_slice %2 {offsets = [0, 3], sizes = [256, 1], strides = [1, 1]} : vector<256x8xf32> to vector<256x1xf32>
    %7 = vector.broadcast %3 : vector<256x1xf32> to vector<256x256xf32>
    %8 = arith.mulf %7, %0 : vector<256x256xf32>
    %9 = vector.broadcast %4 : vector<256x1xf32> to vector<256x256xf32>
    %10 = arith.mulf %9, %1 : vector<256x256xf32>
    %11 = arith.addf %8, %10 : vector<256x256xf32>
    %12 = arith.truncf %11 : vector<256x256xf32> to vector<256x256xbf16>
    %c0_5 = arith.constant 0 : index
    %c0_6 = arith.constant 0 : index
    %13 = vector.load %arg4[%c0_5, %c0_6] : memref<256x256xbf16, #tpu.memory_space<vmem>>, vector<256x256xbf16>
    %cst = arith.constant dense<0.000000e+00> : vector<256x256xf32>
    %14 = tpu.matmul %12, %13, %cst {dimension_numbers = #tpu.dot_dimension_numbers<[1], [0], [0], [1], [0, 0, 1, 1], [], []>} : vector<256x256xbf16>, vector<256x256xbf16>, vector<256x256xf32> -> vector<256x256xf32>
    %c0_7 = arith.constant 0 : index
    %c0_8 = arith.constant 0 : index
    %15 = vector.load %arg5[%c0_7, %c0_8] : memref<1x256xf32, #tpu.memory_space<vmem>>, vector<1x256xf32>
    %16 = vector.broadcast %5 : vector<256x1xf32> to vector<256x256xf32>
    %17 = vector.broadcast %15 : vector<1x256xf32> to vector<256x256xf32>
    %18 = arith.mulf %16, %17 : vector<256x256xf32>
    %c0_9 = arith.constant 0 : index
    %c0_10 = arith.constant 0 : index
    %19 = vector.load %arg6[%c0_9, %c0_10] : memref<1x256xf32, #tpu.memory_space<vmem>>, vector<1x256xf32>
    %20 = vector.broadcast %6 : vector<256x1xf32> to vector<256x256xf32>
    %21 = vector.broadcast %19 : vector<1x256xf32> to vector<256x256xf32>
    %22 = arith.mulf %20, %21 : vector<256x256xf32>
    %23 = arith.addf %18, %22 : vector<256x256xf32>
    %24 = arith.addf %14, %23 : vector<256x256xf32>
    %cst_11 = arith.constant 0.000000e+00 : f32
    %25 = vector.broadcast %cst_11 : f32 to vector<256x256xf32>
    %26 = arith.maximumf %24, %25 : vector<256x256xf32>
    %27 = arith.truncf %26 : vector<256x256xf32> to vector<256x256xbf16>
    %c0_12 = arith.constant 0 : index
    %c0_13 = arith.constant 0 : index
    %28 = vector.load %arg7[%c0_12, %c0_13] : memref<256x256xbf16, #tpu.memory_space<vmem>>, vector<256x256xbf16>
    %cst_14 = arith.constant dense<0.000000e+00> : vector<256x256xf32>
    %29 = tpu.matmul %27, %28, %cst_14 {dimension_numbers = #tpu.dot_dimension_numbers<[1], [0], [0], [1], [0, 0, 1, 1], [], []>} : vector<256x256xbf16>, vector<256x256xbf16>, vector<256x256xf32> -> vector<256x256xf32>
    %30 = arith.subf %29, %1 : vector<256x256xf32>
    %31 = arith.mulf %30, %30 : vector<256x256xf32>
    %32 = vector.extract_strided_slice %31 {offsets = [0, 0], sizes = [8, 256], strides = [1, 1]} : vector<256x256xf32> to vector<8x256xf32>
    %33 = vector.extract_strided_slice %31 {offsets = [8, 0], sizes = [8, 256], strides = [1, 1]} : vector<256x256xf32> to vector<8x256xf32>
    %34 = arith.addf %32, %33 : vector<8x256xf32>
    %35 = vector.extract_strided_slice %31 {offsets = [16, 0], sizes = [8, 256], strides = [1, 1]} : vector<256x256xf32> to vector<8x256xf32>
    %36 = arith.addf %34, %35 : vector<8x256xf32>
    %37 = vector.extract_strided_slice %31 {offsets = [24, 0], sizes = [8, 256], strides = [1, 1]} : vector<256x256xf32> to vector<8x256xf32>
    %38 = arith.addf %36, %37 : vector<8x256xf32>
    %39 = vector.extract_strided_slice %31 {offsets = [32, 0], sizes = [8, 256], strides = [1, 1]} : vector<256x256xf32> to vector<8x256xf32>
    %40 = arith.addf %38, %39 : vector<8x256xf32>
    %41 = vector.extract_strided_slice %31 {offsets = [40, 0], sizes = [8, 256], strides = [1, 1]} : vector<256x256xf32> to vector<8x256xf32>
    %42 = arith.addf %40, %41 : vector<8x256xf32>
    %43 = vector.extract_strided_slice %31 {offsets = [48, 0], sizes = [8, 256], strides = [1, 1]} : vector<256x256xf32> to vector<8x256xf32>
    %44 = arith.addf %42, %43 : vector<8x256xf32>
    %45 = vector.extract_strided_slice %31 {offsets = [56, 0], sizes = [8, 256], strides = [1, 1]} : vector<256x256xf32> to vector<8x256xf32>
    %46 = arith.addf %44, %45 : vector<8x256xf32>
    %47 = vector.extract_strided_slice %31 {offsets = [64, 0], sizes = [8, 256], strides = [1, 1]} : vector<256x256xf32> to vector<8x256xf32>
    %48 = arith.addf %46, %47 : vector<8x256xf32>
    %49 = vector.extract_strided_slice %31 {offsets = [72, 0], sizes = [8, 256], strides = [1, 1]} : vector<256x256xf32> to vector<8x256xf32>
    %50 = arith.addf %48, %49 : vector<8x256xf32>
    %51 = vector.extract_strided_slice %31 {offsets = [80, 0], sizes = [8, 256], strides = [1, 1]} : vector<256x256xf32> to vector<8x256xf32>
    %52 = arith.addf %50, %51 : vector<8x256xf32>
    %53 = vector.extract_strided_slice %31 {offsets = [88, 0], sizes = [8, 256], strides = [1, 1]} : vector<256x256xf32> to vector<8x256xf32>
    %54 = arith.addf %52, %53 : vector<8x256xf32>
    %55 = vector.extract_strided_slice %31 {offsets = [96, 0], sizes = [8, 256], strides = [1, 1]} : vector<256x256xf32> to vector<8x256xf32>
    %56 = arith.addf %54, %55 : vector<8x256xf32>
    %57 = vector.extract_strided_slice %31 {offsets = [104, 0], sizes = [8, 256], strides = [1, 1]} : vector<256x256xf32> to vector<8x256xf32>
    %58 = arith.addf %56, %57 : vector<8x256xf32>
    %59 = vector.extract_strided_slice %31 {offsets = [112, 0], sizes = [8, 256], strides = [1, 1]} : vector<256x256xf32> to vector<8x256xf32>
    %60 = arith.addf %58, %59 : vector<8x256xf32>
    %61 = vector.extract_strided_slice %31 {offsets = [120, 0], sizes = [8, 256], strides = [1, 1]} : vector<256x256xf32> to vector<8x256xf32>
    %62 = arith.addf %60, %61 : vector<8x256xf32>
    %63 = vector.extract_strided_slice %31 {offsets = [128, 0], sizes = [8, 256], strides = [1, 1]} : vector<256x256xf32> to vector<8x256xf32>
    %64 = arith.addf %62, %63 : vector<8x256xf32>
    %65 = vector.extract_strided_slice %31 {offsets = [136, 0], sizes = [8, 256], strides = [1, 1]} : vector<256x256xf32> to vector<8x256xf32>
    %66 = arith.addf %64, %65 : vector<8x256xf32>
    %67 = vector.extract_strided_slice %31 {offsets = [144, 0], sizes = [8, 256], strides = [1, 1]} : vector<256x256xf32> to vector<8x256xf32>
    %68 = arith.addf %66, %67 : vector<8x256xf32>
    %69 = vector.extract_strided_slice %31 {offsets = [152, 0], sizes = [8, 256], strides = [1, 1]} : vector<256x256xf32> to vector<8x256xf32>
    %70 = arith.addf %68, %69 : vector<8x256xf32>
    %71 = vector.extract_strided_slice %31 {offsets = [160, 0], sizes = [8, 256], strides = [1, 1]} : vector<256x256xf32> to vector<8x256xf32>
    %72 = arith.addf %70, %71 : vector<8x256xf32>
    %73 = vector.extract_strided_slice %31 {offsets = [168, 0], sizes = [8, 256], strides = [1, 1]} : vector<256x256xf32> to vector<8x256xf32>
    %74 = arith.addf %72, %73 : vector<8x256xf32>
    %75 = vector.extract_strided_slice %31 {offsets = [176, 0], sizes = [8, 256], strides = [1, 1]} : vector<256x256xf32> to vector<8x256xf32>
    %76 = arith.addf %74, %75 : vector<8x256xf32>
    %77 = vector.extract_strided_slice %31 {offsets = [184, 0], sizes = [8, 256], strides = [1, 1]} : vector<256x256xf32> to vector<8x256xf32>
    %78 = arith.addf %76, %77 : vector<8x256xf32>
    %79 = vector.extract_strided_slice %31 {offsets = [192, 0], sizes = [8, 256], strides = [1, 1]} : vector<256x256xf32> to vector<8x256xf32>
    %80 = arith.addf %78, %79 : vector<8x256xf32>
    %81 = vector.extract_strided_slice %31 {offsets = [200, 0], sizes = [8, 256], strides = [1, 1]} : vector<256x256xf32> to vector<8x256xf32>
    %82 = arith.addf %80, %81 : vector<8x256xf32>
    %83 = vector.extract_strided_slice %31 {offsets = [208, 0], sizes = [8, 256], strides = [1, 1]} : vector<256x256xf32> to vector<8x256xf32>
    %84 = arith.addf %82, %83 : vector<8x256xf32>
    %85 = vector.extract_strided_slice %31 {offsets = [216, 0], sizes = [8, 256], strides = [1, 1]} : vector<256x256xf32> to vector<8x256xf32>
    %86 = arith.addf %84, %85 : vector<8x256xf32>
    %87 = vector.extract_strided_slice %31 {offsets = [224, 0], sizes = [8, 256], strides = [1, 1]} : vector<256x256xf32> to vector<8x256xf32>
    %88 = arith.addf %86, %87 : vector<8x256xf32>
    %89 = vector.extract_strided_slice %31 {offsets = [232, 0], sizes = [8, 256], strides = [1, 1]} : vector<256x256xf32> to vector<8x256xf32>
    %90 = arith.addf %88, %89 : vector<8x256xf32>
    %91 = vector.extract_strided_slice %31 {offsets = [240, 0], sizes = [8, 256], strides = [1, 1]} : vector<256x256xf32> to vector<8x256xf32>
    %92 = arith.addf %90, %91 : vector<8x256xf32>
    %93 = vector.extract_strided_slice %31 {offsets = [248, 0], sizes = [8, 256], strides = [1, 1]} : vector<256x256xf32> to vector<8x256xf32>
    %94 = arith.addf %92, %93 : vector<8x256xf32>
    %c0_15 = arith.constant 0 : index
    %c0_16 = arith.constant 0 : index
    %95 = vector.load %arg8[%c0_15, %c0_16] : memref<8x256xf32, #tpu.memory_space<vmem>>, vector<8x256xf32>
    tpu.vector_store %arg8[%c0_15, %c0_16], %94 {strides = array<i32>} : memref<8x256xf32, #tpu.memory_space<vmem>>, vector<8x256xf32>,
    return
  }
  func.func @transform_0(%arg0: i32) -> (i32, i32) {
    %c0_i32 = arith.constant 0 : i32
    %c0_i32_0 = arith.constant 0 : i32
    return %arg0, %c0_i32 : i32, i32
  }
  func.func @transform_1(%arg0: i32) -> (i32, i32) {
    %c0_i32 = arith.constant 0 : i32
    %c0_i32_0 = arith.constant 0 : i32
    return %arg0, %c0_i32 : i32, i32
  }
  func.func @transform_2(%arg0: i32) -> (i32, i32) {
    %c0_i32 = arith.constant 0 : i32
    %c0_i32_0 = arith.constant 0 : i32
    return %arg0, %c0_i32 : i32, i32
  }
  func.func @transform_3(%arg0: i32) -> (i32, i32) {
    %c0_i32 = arith.constant 0 : i32
    %c0_i32_0 = arith.constant 0 : i32
    %c0_i32_1 = arith.constant 0 : i32
    return %c0_i32, %c0_i32_0 : i32, i32
  }
  func.func @transform_4(%arg0: i32) -> (i32, i32) {
    %c0_i32 = arith.constant 0 : i32
    %c0_i32_0 = arith.constant 0 : i32
    %c0_i32_1 = arith.constant 0 : i32
    return %c0_i32, %c0_i32_0 : i32, i32
  }
  func.func @transform_5(%arg0: i32) -> (i32, i32) {
    %c0_i32 = arith.constant 0 : i32
    %c0_i32_0 = arith.constant 0 : i32
    %c0_i32_1 = arith.constant 0 : i32
    return %c0_i32, %c0_i32_0 : i32, i32
  }
  func.func @transform_6(%arg0: i32) -> (i32, i32) {
    %c0_i32 = arith.constant 0 : i32
    %c0_i32_0 = arith.constant 0 : i32
    %c0_i32_1 = arith.constant 0 : i32
    return %c0_i32, %c0_i32_0 : i32, i32
  }
  func.func @transform_7(%arg0: i32) -> (i32, i32) {
    %c0_i32 = arith.constant 0 : i32
    %c0_i32_0 = arith.constant 0 : i32
    return %arg0, %c0_i32 : i32, i32
  }
}

</mosaic_0001>

<bundles_post_ra>
// kernel: tpu_custom_call.1
= control target key start
LH: loop header
LB: loop body
LE: loop exit
PB: predicated region body
PF: predicated region fallthrough
CT: control target
= control target key end

     0   :  { %s4377_s0 = inlined_call_operand.hbm [shape: f32[512,256], index: 0, kind: input, shape index: {}]   ;;  %s4378_s1 = inlined_call_operand.hbm [shape: f32[512,256], index: 1, kind: input, shape index: {}]   ;;  %s4379_s2 = inlined_call_operand.vmem [shape: f32[512,8], index: 2, kind: input, shape index: {}]   ;;  %s4380_s3 = inlined_call_operand.vmem [shape: bf16[256,256], index: 3, kind: input, shape index: {}]   ;;  %s4381_s4 = inlined_call_operand.vmem [shape: f32[1,256], index: 4, kind: input, shape index: {}]   ;;  %s4382_s5 = inlined_call_operand.vmem [shape: f32[1,256], index: 5, kind: input, shape index: {}]   ;;  %s4383_s6 = inlined_call_operand.vmem [shape: bf16[256,256], index: 6, kind: input, shape index: {}]   ;;  %s4384_s7 = inlined_call_operand.hbm [shape: f32[16,256], index: 7, kind: output, shape index: {}]  }
   0x1   :  { %4390 = sst [smem:[#allocation12_spill]] %s4377_s0 }
   0x2   :  { %12 = vsyncpa [#allocation3], 0 }
   0x3   :  { %14 = vsyncpa [#allocation3 + $0x1], 0 }
   0x4   :  { %15 = vsyncpa [#allocation6], 0 }
   0x5   :  { %17 = vsyncpa [#allocation6 + $0x1], 0 }
   0x6   :  { %18 = vsyncpa [#allocation4], 0 }
   0x7   :  { %20 = vsyncpa [#allocation4 + $0x1], 0  ;;  %s3274_s24 = smov 0   ;;  %s3276_s25 = smov 0  }
   0x8   :  { %s3278_s26 = smov 0   ;;  %s3280_s27 = smov 0  }
   0x9 LB: > { %s3295_s28 = sadd.s32 4294967295, %s3223_s27   ;;  %s2685_s29 = sadd.s32 4294967294, %s3223_s27   ;;  %s3223_s27 = sphi %s3280_s27, %s4410_s27   ;;  %s3219_s26 = sphi %s3278_s26, %s4409_s26   ;;  %s3215_s25 = sphi %s3276_s25, %s4408_s25   ;;  %s3211_s24 = sphi %s3274_s24, %s4407_s24  }
   0xa   : > { %s3299_s30 = sadd.s32 1, %s3223_s27   ;;  %s33_s8 = sadd.s32 1, %s3219_s26 }
   0xb   : > { %s30_s9 = ssub.s32 %s3223_s27, %s3299_s30  ;;  %p40_p0 = scmp.ne.s32.totalorder %s3219_s26, %s3215_s25 }
   0xc   : > { %p31_p1 = scmp.eq.s32.totalorder %s30_s9, 0  ;;  %p41_p2 = scmp.eq.s32.totalorder %s3223_s27, 0 }
   0xd   : > { %p46_p3 = scmp.ne.s32.totalorder %s3215_s25, %s3211_s24  ;;  %p47_p4 = scmp.eq.s32.totalorder %s3295_s28, 0 }
   0xe   : > { %s3311_s10 = scalar_select %p31_p1, %s3219_s26, %s33_s8  }
   0xf   : > { %p3313_p5 = por %p41_p2, %p40_p0  ;;  %p3317_p6 = por %p47_p4, %p46_p3 }
  0x10   : > { %4391 = sst [smem:[#allocation11_spill]] %s3311_s10  ;;  %p206_p7 = scmp.eq.s32.totalorder %s3295_s28, 1 }
  0x11   : > { %s4393_s12 = scalar_select %p3317_p6, 1, 0 }
  0x12   : > { %p212_p8 = scmp.eq.s32.totalorder %s2685_s29, 1  ;;  %p2793_p10 = scmp.lt.s32.totalorder %s3223_s27, 2 }
  0x13   : > { %p3324_p11 = por %p206_p7, %p40_p0  ;;  %s3333_s15 = sand.u32 1, %s3219_s26  }
  0x14   : > { %p3328_p12 = por %p212_p8, %p46_p3  ;;  %s4386_s16 = sshll.u32 %s3223_s27, 13 }
  0x15   : > { %s4394_s13 = scalar_select %p3324_p11, 1, 0 }
  0x16   : > { %s4395_s14 = scalar_select %p3328_p12, 1, 0 }
  0x17   : > { %s4385_s17 = sshll.u32 %s3333_s15, 9  ;;  %s4396_s0 = sld [smem:[#allocation12_spill]] }
  0x18   : > { %s248_s21 = scalar_lea.vmem [#allocation2], %s4385_s17  ;;  %p3348_p13 = pnand %p2793_p10, %p3313_p5 }
  0x19   : > { %s256_s22 = sshll.u32 %s248_s21, 4  ;;  %s245_s29 = scalar_lea.sflag [#allocation3], %s3333_s15  ;;  %s3352_s22 = int_to_ptr.vmem [resolvable:$true] %s256_s22 }
  0x1a   : > { %p3101_p1 = pneg %p3348_p13 }
  0x1d   : > { %s3342_s20 = scalar_lea.hbm %s4396_s0, %s4386_s16  ;;  %s3104_s11 = scalar_lea.hbm %s4396_s0, 16384 }
  0x1e   : > { %s3099_s8 = scalar_lea.hbm %s3342_s20, 8192  ;;  %p3105_p4 = scmp.lt.s32.totalorder %s3342_s20, %s4396_s0 }
  0x1f   : > { %p3100_p0 = scmp.ne.s32.totalorder %s3342_s20, %s3099_s8  ;;  %p3106_p5 = scmp.lt.s32.totalorder %s3104_s11, %s3099_s8 }
  0x21   : > { %p3102_p2 = pnand %p3101_p1, %p3100_p0  ;;  %p3107_p7 = por %p3106_p5, %p3105_p4 }
  0x23   : > { %p3103_p3 = pneg %p3102_p2 }
  0x25   : > { %p3108_p8 = pnand %p3107_p7, %p3103_p3 }
  0x27   : > { %3111 = shalt.err (!%p3108_p8)
}
  0x28   : > { %s3112_s17 = scalar_lea.vmem %s3352_s22, 8192  ;;  %s3225_s9 = smov [#allocation2]  }
  0x29   : > { %p3113_p10 = scmp.ne.s32.totalorder %s3352_s22, %s3112_s17  ;;  %s3117_s18 = sshll.u32 %s3225_s9, 4  ;;  %s3118_s18 = int_to_ptr.vmem [resolvable:$false] %s3117_s18 }
  0x2a   : > { %s3119_s16 = scalar_lea.vmem %s3118_s18, 16384  ;;  %p3120_p9 = scmp.lt.s32.totalorder %s3352_s22, %s3118_s18 }
  0x2b   : > { %p3115_p0 = pnand %p3113_p10, %p3101_p1  ;;  %p3121_p12 = scmp.lt.s32.totalorder %s3119_s16, %s3112_s17 }
  0x2d   : > { %p3116_p2 = pneg %p3115_p0  ;;  %p3122_p11 = por %p3121_p12, %p3120_p9 }
  0x2f   : > { %p3123_p4 = pnand %p3122_p11, %p3116_p2 }
  0x31   : > { %3126 = shalt.err (!%p3123_p4)
}
  0x32   : > { %s4388_s8 = smov 256   ;;  %s3227_s11 = smov 16  }
  0x33   : > { %2785 = dma.hbm_to_vmem [thread:$0]  (!%p3348_p13), %s3342_s20, 8192, %s3352_s22, %s245_s29, %s4388_s8, %s4388_s8, %s3227_s11  }
  0x34   : > { %p2696_p9 = scmp.ge.s32.totalorder %s3223_s27, 1  ;;  %p295_p11 = scmp.lt.s32.totalorder %s3223_s27, 3 }
  0x35   : > { %s4399_s17 = sshll.u32 %s3223_s27, 13  ;;  %s4400_s18 = sshll.u32 %s3333_s15, 9 }
  0x36   : > { %p3386_p12 = pnand %p2696_p9, %p295_p11  ;;  %s3395_s9 = scalar_lea.hbm %s4378_s1, %s4399_s17 }
  0x37   : > { %s270_s0 = scalar_lea.vmem [#allocation5], %s4400_s18  ;;  %s267_s20 = scalar_lea.sflag [#allocation6], %s3333_s15 }
  0x38   : > { %s278_s10 = sshll.u32 %s270_s0, 4  ;;  %s3127_s22 = scalar_lea.hbm %s3395_s9, 8192  ;;  %s3399_s10 = int_to_ptr.vmem [resolvable:$true] %s278_s10 }
  0x39   : > { %p3128_p3 = scmp.ne.s32.totalorder %s3395_s9, %s3127_s22  ;;  %s3132_s17 = scalar_lea.hbm %s4378_s1, 16384 }
  0x3a   : > { %p3133_p8 = scmp.lt.s32.totalorder %s3395_s9, %s4378_s1  ;;  %p3134_p10 = scmp.lt.s32.totalorder %s3132_s17, %s3127_s22 }
  0x3b   : > { %p3130_p5 = pnand %p3128_p3, %p3101_p1 }
  0x3c   : > { %p3135_p0 = por %p3134_p10, %p3133_p8 }
  0x3d   : > { %p3131_p7 = pneg %p3130_p5 }
  0x3f   : > { %p3136_p2 = pnand %p3135_p0, %p3131_p7 }
  0x41   : > { %3139 = shalt.err (!%p3136_p2)
}
  0x42   : > { %s3140_s0 = scalar_lea.vmem %s3399_s10, 8192  ;;  %s3228_s15 = smov [#allocation5]  }
  0x43   : > { %p3141_p4 = scmp.ne.s32.totalorder %s3399_s10, %s3140_s0  ;;  %s3145_s8 = sshll.u32 %s3228_s15, 4  ;;  %s3146_s8 = int_to_ptr.vmem [resolvable:$false] %s3145_s8 }
  0x44   : > { %s3147_s18 = scalar_lea.vmem %s3146_s8, 16384  ;;  %p3148_p3 = scmp.lt.s32.totalorder %s3399_s10, %s3146_s8 }
  0x45   : > { %p3143_p9 = pnand %p3141_p4, %p3101_p1  ;;  %p3149_p5 = scmp.lt.s32.totalorder %s3147_s18, %s3140_s0 }
  0x47   : > { %p3144_p11 = pneg %p3143_p9  ;;  %p3150_p6 = por %p3149_p5, %p3148_p3 }
  0x49   : > { %p3151_p8 = pnand %p3150_p6, %p3144_p11 }
  0x4b   : > { %3154 = shalt.err (!%p3151_p8)
}
  0x4c   : > { %s4401_s22 = smov 256   ;;  %299 = sbr.rel (%p3386_p12) target bundleno = 828 (0x33c), region = 48 }
  0x4d   : > { %2788 = dma.hbm_to_vmem [thread:$0]  (!%p3348_p13), %s3395_s9, 8192, %s3399_s10, %s267_s20, %s4401_s22, %s4401_s22, %s3227_s11  }
  0x4e   : > { %s3430_s29 = sand.u32 (!%p3386_p12), 1, %s3215_s25   ;;  %p4402_p6 = scmp.ne.s32.totalorder (!%p3386_p12), %s4393_s12, 0 }
  0x4f   : > { %s2697_s17 = sshll.u32 (!%p3386_p12), %s3430_s29, 9  ;;  %s302_s19 = scalar_lea.sflag (!%p3386_p12), [#allocation3], %s3430_s29 }
  0x50   : > { %s3434_s21 = scalar_lea.vmem (!%p3386_p12), [#allocation2], %s2697_s17 }
  0x51   : > { %3198 = dma.done.wait (%p4402_p6), %s302_s19, 8192  }
  0x52   : > { %3200 = vsyncadd (%p4402_p6), %s302_s19, 4294959104  ;;  %s311_s10 = scalar_lea.sflag [#allocation6], %s3430_s29  ;;  %s3441_s23 = scalar_lea.vmem [#allocation5], %s2697_s17 }
  0x53   : > { %3202 = dma.done.wait (%p4402_p6), %s311_s10, 8192  }
  0x54   : > { %3204 = vsyncadd (%p4402_p6), %s311_s10, 4294959104  ;;  %s2700_s11 = sshll.u32 %s3295_s28, 5  ;;  %v3229_v0 = vmov 1   ;;  %v3230_v1 = vmov 0   ;;  %v2916_v5 = vld [vmem:[%s4380_s3 + $0x74] ss:$8 sps:$4 sm:$0xff]  }
  0x55   : > { %2834 = vset.pattern.permute.xlu1 %v3229_v0  ;;  %2833 = vset.pattern.permute.xlu0 %v3230_v1  ;;  %p358_p13 = scmp.lt.s32.totalorder %s2700_s11, 63  ;;  %v2918_v6 = vld [vmem:[%s4380_s3 + $0x70] ss:$8 sps:$4 sm:$0xff]   ;;  %v2919_v7 = vld [vmem:[%s4380_s3 + $0x64] ss:$8 sps:$4 sm:$0xff]   ;;  %v3231_v60 = vmov 2  }
  0x56   : > { %1699 = vmatprep.subr.bf16.mxu0 %v2916_v5  ;;  %v2921_v9 = vld [vmem:[%s4380_s3 + $0x60] ss:$8 sps:$4 sm:$0xff]   ;;  %v2922_v10 = vld [vmem:[%s4380_s3 + $0x54] ss:$8 sps:$4 sm:$0xff]   ;;  %v2924_v11 = vld [vmem:[%s4380_s3 + $0x50] ss:$8 sps:$4 sm:$0xff]  }
  0x57   : > { %s4412_s11 = smov (!%p358_p13, %s2700_s11), 63  ;;  %1700 = vmatpush1.bf16.msra.mxu0 %v2918_v6  ;;  %v2925_v12 = vld [vmem:[%s4380_s3 + $0x44] ss:$8 sps:$4 sm:$0xff]   ;;  %v2927_v14 = vld [vmem:[%s4380_s3 + $0x40] ss:$8 sps:$4 sm:$0xff]   ;;  %v3232_v62 = vmov 3  }
  0x58   : > { %s2701_s16 = sshll.u32 %s4412_s11, 3  ;;  %1701 = vmatprep.subr.bf16.mxu0 %v2919_v7  ;;  %v2928_v16 = vld [vmem:[%s4380_s3 + $0x34] ss:$8 sps:$4 sm:$0xff]   ;;  %v2930_v18 = vld [vmem:[%s4380_s3 + $0x30] ss:$8 sps:$4 sm:$0xff]   ;;  %v427_v63 = vld [vmem:[%s3441_s23] sm:$0xff] }
  0x59   : > { %s3453_s0 = scalar_lea.vmem %s4379_s2, %s2701_s16  ;;  %v2931_v19 = vld [vmem:[%s4380_s3 + $0x24] ss:$8 sps:$4 sm:$0xff]   ;;  %v2933_v20 = vld [vmem:[%s4380_s3 + $0x20] ss:$8 sps:$4 sm:$0xff]   ;;  %v2934_v21 = vld [vmem:[%s4380_s3 + $0x14] ss:$8 sps:$4 sm:$0xff]  }
  0x5a   : > { %v3456_v2 = vld [vmem:[%s3453_s0] sm:$0xff]  ;;  %v3461_v3 = vld [vmem:[%s3453_s0 + $0x8] sm:$0xff]  ;;  %v3466_v4 = vld [vmem:[%s3453_s0 + $0x10] sm:$0xff]  ;;  %s2775_s20 = sshll.u32 %s3295_s28, 8  ;;  %s2566_s17 = scalar_lea.sflag [#allocation4], %s3430_s29 }
  0x5b   : > { %748 = vperm.xlu1 %2834, %v3456_v2   ;;  %525 = vperm.xlu0 %2833, %v3456_v2   ;;  %v494_v8 = vld [vmem:[%s3453_s0 + $0x18] sm:$0xff]  ;;  %v3496_v13 = vld [vmem:[%s3453_s0 + $0x30] sm:$0xff]  ;;  %v495_v15 = vld [vmem:[%s3453_s0 + $0x20] sm:$0xff]  ;;  %s2578_s22 = scalar_lea.hbm %s4384_s7, %s2775_s20  ;;  %p4403_p12 = scmp.ne.s32.totalorder %s4394_s13, 0 }
  0x5c   : > { %1702 = vmatpush1.bf16.msra.mxu0 %v2921_v9  ;;  %v3508_v17 = vld [vmem:[%s3453_s0 + $0x28] sm:$0xff]  ;;  %v2936_v23 = vld [vmem:[%s4380_s3 + $0x10] ss:$8 sps:$4 sm:$0xff]   ;;  %v2940_v28 = vld [vmem:[%s4380_s3 + $0xf4] ss:$8 sps:$4 sm:$0xff]   ;;  %s3233_s28 = smov [#allocation7]  }
  0x5d   : > { %1703 = vmatprep.subr.bf16.mxu0 %v2922_v10  ;;  %v3527_v22 = vld [vmem:[%s3453_s0 + $0x48] sm:$0xff]  ;;  %v498_v25 = vld [vmem:[%s3453_s0 + $0x38] sm:$0xff]  ;;  %v3539_v26 = vld [vmem:[%s3453_s0 + $0x50] sm:$0xff] }
  0x5e   : > { %v2937_v24 = vld [vmem:[%s4380_s3 + $0x4] ss:$8 sps:$4 sm:$0xff]   ;;  %v2939_v27 = vld [vmem:[%s4380_s3] ss:$8 sps:$4 sm:$0xff]   ;;  %v2942_v29 = vld [vmem:[%s4380_s3 + $0xf0] ss:$8 sps:$4 sm:$0xff]  }
  0x5f   : > { %752 = vperm.xlu1 %2834, %v3461_v3   ;;  %530 = vperm.xlu0 %2833, %v3461_v3   ;;  %v2943_v30 = vld [vmem:[%s4380_s3 + $0xe4] ss:$8 sps:$4 sm:$0xff]   ;;  %v3560_v32 = vld [vmem:[%s3453_s0 + $0x70] sm:$0xff]  ;;  %v2945_v33 = vld [vmem:[%s4380_s3 + $0xe0] ss:$8 sps:$4 sm:$0xff]  }
  0x60   : > { %1704 = vmatpush1.bf16.msra.mxu0 %v2924_v11  ;;  %v499_v31 = vld [vmem:[%s3453_s0 + $0x40] sm:$0xff]  ;;  %v2946_v34 = vld [vmem:[%s4380_s3 + $0xd4] ss:$8 sps:$4 sm:$0xff]   ;;  %v3571_v35 = vld [vmem:[%s3453_s0 + $0x68] sm:$0xff] }
  0x61   : > { %1705 = vmatprep.subr.bf16.mxu0 %v2925_v12  ;;  %v2948_v36 = vld [vmem:[%s4380_s3 + $0xd0] ss:$8 sps:$4 sm:$0xff]   ;;  %v2949_v37 = vld [vmem:[%s4380_s3 + $0xc4] ss:$8 sps:$4 sm:$0xff]   ;;  %v2951_v38 = vld [vmem:[%s4380_s3 + $0xc0] ss:$8 sps:$4 sm:$0xff]  }
  0x62   : > { %v2952_v39 = vld [vmem:[%s4380_s3 + $0xb4] ss:$8 sps:$4 sm:$0xff]   ;;  %v3592_v41 = vld [vmem:[%s3453_s0 + $0x88] sm:$0xff]  ;;  %v2954_v42 = vld [vmem:[%s4380_s3 + $0xb0] ss:$8 sps:$4 sm:$0xff]  }
  0x63   : > { %2835 = vset.pattern.permute.xlu1 %v3230_v1  ;;  %535 = vperm.xlu0 %2833, %v3466_v4   ;;  %v502_v40 = vld [vmem:[%s3453_s0 + $0x58] sm:$0xff]  ;;  %v2955_v43 = vld [vmem:[%s4380_s3 + $0xa4] ss:$8 sps:$4 sm:$0xff]   ;;  %v3603_v44 = vld [vmem:[%s3453_s0 + $0x90] sm:$0xff] }
  0x64   : > { %540 = vperm.xlu1 %2835, %v494_v8   ;;  %1706 = vmatpush1.bf16.msra.mxu0 %v2927_v14  ;;  %v2957_v45 = vld [vmem:[%s4380_s3 + $0xa0] ss:$8 sps:$4 sm:$0xff]   ;;  %v2958_v46 = vld [vmem:[%s4380_s3 + $0x94] ss:$8 sps:$4 sm:$0xff]   ;;  %v2960_v47 = vld [vmem:[%s4380_s3 + $0x90] ss:$8 sps:$4 sm:$0xff]  }
  0x65   : > { %1707 = vmatprep.subr.bf16.mxu0 %v2928_v16  ;;  %v2961_v48 = vld [vmem:[%s4380_s3 + $0x84] ss:$8 sps:$4 sm:$0xff]   ;;  %v2963_v50 = vld [vmem:[%s4380_s3 + $0x80] ss:$8 sps:$4 sm:$0xff]   ;;  %v3627_v51 = vld [vmem:[%s3453_s0 + $0xb0] sm:$0xff] }
  0x66   : > { %v503_v49 = vld [vmem:[%s3453_s0 + $0x60] sm:$0xff]  ;;  %v3632_v52 = vld [vmem:[%s3453_s0 + $0xa8] sm:$0xff]  ;;  %v506_v53 = vld [vmem:[%s3453_s0 + $0x78] sm:$0xff] }
  0x67   : > { %2836 = vset.pattern.permute.xlu0 %v3229_v0  ;;  %v3640_v54 = vld [vmem:[%s3453_s0 + $0xc8] sm:$0xff]  ;;  %v3645_v55 = vld [vmem:[%s3453_s0 + $0xd0] sm:$0xff]  ;;  %v507_v56 = vld [vmem:[%s3453_s0 + $0x80] sm:$0xff] }
  0x68   : > { %2837 = vset.pattern.permute.xlu1 %v3229_v0  ;;  %756 = vperm.xlu0 %2836, %v3466_v4   ;;  %v3655_v57 = vld [vmem:[%s3453_s0 + $0xe8] sm:$0xff]  ;;  %v3660_v58 = vld [vmem:[%s3453_s0 + $0xf0] sm:$0xff]  ;;  %v510_v59 = vld [vmem:[%s3453_s0 + $0x98] sm:$0xff] }
  0x69   : > { %760 = vperm.xlu1 %2837, %v494_v8   ;;  %1708 = vmatpush1.bf16.msra.mxu0 %v2930_v18  ;;  %v511_v61 = vld [vmem:[%s3453_s0 + $0xa0] sm:$0xff]  ;;  %v428_v5 = vld [vmem:[%s3441_s23 + $0x8] sm:$0xff]  ;;  %v429_v9 = vld [vmem:[%s3441_s23 + $0x10] sm:$0xff] }
  0x6a   : > { %1709 = vmatprep.subr.bf16.mxu0 %v2931_v19  ;;  %v363_v7 = vld [vmem:[%s3434_s21] sm:$0xff]  ;;  %v364_v8 = vld [vmem:[%s3434_s21 + $0x8] sm:$0xff]  ;;  %v430_v10 = vld [vmem:[%s3441_s23 + $0x18] sm:$0xff] }
  0x6b   : > { %v365_v11 = vld [vmem:[%s3434_s21 + $0x10] sm:$0xff]  ;;  %v366_v12 = vld [vmem:[%s3434_s21 + $0x18] sm:$0xff] }
  0x6c   : > { %772 = vperm.xlu0 %2836, %v3496_v13   ;;  %v514_v18 = vld [vmem:[%s3453_s0 + $0xb8] sm:$0xff] }
  0x6d   : > { %2838 = vset.pattern.permute.xlu1 %v3230_v1  ;;  %1710 = vmatpush1.bf16.msra.mxu0 %v2933_v20 }
  0x6e   : > { %545 = vperm.xlu1 %2838, %v495_v15   ;;  %1711 = vmatprep.subr.bf16.mxu0 %v2934_v21 }
  0x70   : > { %2841 = vset.pattern.permute.xlu0 %v3230_v1 }
  0x71   : > { %550 = vperm.xlu0 %2841, %v3508_v17   ;;  %1712 = vmatpush1.bf16.msra.mxu0 %v2936_v23 }
  0x72   : > { %2839 = vset.pattern.permute.xlu1 %v3229_v0  ;;  %1713 = vmatprep.subr.bf16.mxu0 %v2937_v24 }
  0x73   : > { %764 = vperm.xlu1 %2839, %v495_v15  }
  0x75   : > { %555 = vperm.xlu0 %2841, %v3496_v13   ;;  %1714 = vmatpush1.bf16.msra.mxu0 %v2939_v27 }
  0x76   : > { %1715 = vmatprep.subr.bf16.mxu0 %v2940_v28 }
  0x77   : > { %768 = vperm.xlu1 %2839, %v3508_v17  }
  0x79   : > { %570 = vperm.xlu0 %2841, %v3527_v22   ;;  %1716 = vmatpush2.bf16.msra.mxu0 %v2942_v29 }
  0x7a   : > { %1717 = vmatprep.subr.bf16.mxu0 %v2943_v30 }
  0x7b   : > { %2840 = vset.pattern.permute.xlu1 %v3230_v1 }
  0x7c   : > { %560 = vperm.xlu1 %2840, %v498_v25  }
  0x7d   : > { %575 = vperm.xlu0 %2841, %v3539_v26   ;;  %1718 = vmatpush2.bf16.msra.mxu0 %v2945_v33 }
  0x7e   : > { %1719 = vmatprep.subr.bf16.mxu0 %v2946_v34  ;;  %v367_v34 = vld [vmem:[%s3434_s21 + $0x20] sm:$0xff] }
  0x80   : > { %2842 = vset.pattern.permute.xlu1 %v3229_v0 }
  0x81   : > { %776 = vperm.xlu1 %2842, %v498_v25   ;;  %2846 = vset.pattern.permute.xlu0 %v3229_v0 }
  0x82   : > { %788 = vperm.xlu0 %2846, %v3539_v26   ;;  %1720 = vmatpush2.bf16.msra.mxu0 %v2948_v36  ;;  %v368_v36 = vld [vmem:[%s3434_s21 + $0x28] sm:$0xff] }
  0x83   : > { %1721 = vmatprep.subr.bf16.mxu0 %v2949_v37 }
  0x85   : > { %2843 = vset.pattern.permute.xlu1 %v3230_v1 }
  0x86   : > { %565 = vperm.xlu1 %2843, %v499_v31   ;;  %804 = vperm.xlu0 %2846, %v3560_v32  }
  0x87   : > { %1722 = vmatpush2.bf16.msra.mxu0 %v2951_v38 }
  0x88   : > { %1723 = vmatprep.subr.bf16.mxu0 %v2952_v39  ;;  %v431_v39 = vld [vmem:[%s3441_s23 + $0x20] sm:$0xff] }
  0x8a   : > { %2844 = vset.pattern.permute.xlu1 %v3229_v0  ;;  %2851 = vset.pattern.permute.xlu0 %v3230_v1 }
  0x8b   : > { %780 = vperm.xlu1 %2844, %v499_v31   ;;  %590 = vperm.xlu0 %2851, %v3571_v35  }
  0x8c   : > { %1724 = vmatpush2.bf16.msra.mxu0 %v2954_v42  ;;  %v370_v42 = vld [vmem:[%s3434_s21 + $0x38] sm:$0xff] }
  0x8d   : > { %1725 = vmatprep.subr.bf16.mxu0 %v2955_v43 }
  0x8f   : > { %784 = vperm.xlu1 %2844, %v3527_v22   ;;  %595 = vperm.xlu0 %2851, %v3560_v32  }
  0x90   : > { %1726 = vmatpush2.bf16.msra.mxu0 %v2957_v45 }
  0x91   : > { %1727 = vmatprep.subr.bf16.mxu0 %v2958_v46  ;;  %v433_v46 = vld [vmem:[%s3441_s23 + $0x30] sm:$0xff] }
  0x93   : > { %2845 = vset.pattern.permute.xlu1 %v3230_v1  ;;  %610 = vperm.xlu0 %2851, %v3592_v41  }
  0x94   : > { %580 = vperm.xlu1 %2845, %v502_v40   ;;  %1728 = vmatpush2.bf16.msra.mxu0 %v2960_v47  ;;  %v434_v47 = vld [vmem:[%s3441_s23 + $0x38] sm:$0xff] }
  0x95   : > { %1729 = vmatprep.subr.bf16.mxu0 %v2961_v48 }
  0x97   : > { %615 = vperm.xlu0 %2851, %v3603_v44  }
  0x98   : > { %2847 = vset.pattern.permute.xlu1 %v3229_v0  ;;  %1730 = vmatpush2.bf16.msra.mxu0 %v2963_v50 }
  0x99   : > { %792 = vperm.xlu1 %2847, %v502_v40   ;;  %v432_v40 = vld [vmem:[%s3441_s23 + $0x28] sm:$0xff] }
  0x9b   : > { %2856 = vset.pattern.permute.xlu0 %v3229_v0 }
  0x9c   : > { %820 = vperm.xlu0 %2856, %v3603_v44  }
  0x9d   : > { %2848 = vset.pattern.permute.xlu1 %v3230_v1 }
  0x9e   : > { %585 = vperm.xlu1 %2848, %v503_v49  }
  0xa0   : > { %836 = vperm.xlu0 %2856, %v3627_v51  }
  0xa2   : > { %2849 = vset.pattern.permute.xlu1 %v3229_v0 }
  0xa3   : > { %796 = vperm.xlu1 %2849, %v503_v49   ;;  %v515_v49 = vld [vmem:[%s3453_s0 + $0xc0] sm:$0xff] }
  0xa4   : > { %2861 = vset.pattern.permute.xlu0 %v3230_v1 }
  0xa5   : > { %630 = vperm.xlu0 %2861, %v3632_v52  }
  0xa7   : > { %800 = vperm.xlu1 %2849, %v3571_v35  }
  0xa9   : > { %635 = vperm.xlu0 %2861, %v3627_v51  }
  0xab   : > { %2850 = vset.pattern.permute.xlu1 %v3230_v1 }
  0xac   : > { %600 = vperm.xlu1 %2850, %v506_v53  }
  0xad   : > { %650 = vperm.xlu0 %2861, %v3640_v54  }
  0xb0   : > { %2852 = vset.pattern.permute.xlu1 %v3229_v0 }
  0xb1   : > { %808 = vperm.xlu1 %2852, %v506_v53   ;;  %2866 = vset.pattern.permute.xlu0 %v3229_v0 }
  0xb2   : > { %852 = vperm.xlu0 %2866, %v3645_v55  }
  0xb5   : > { %2853 = vset.pattern.permute.xlu1 %v3230_v1 }
  0xb6   : > { %605 = vperm.xlu1 %2853, %v507_v56   ;;  %2867 = vset.pattern.permute.xlu0 %v3230_v1 }
  0xb7   : > { %655 = vperm.xlu0 %2867, %v3645_v55  }
  0xba   : > { %2854 = vset.pattern.permute.xlu1 %v3229_v0 }
  0xbb   : > { %812 = vperm.xlu1 %2854, %v507_v56   ;;  %670 = vperm.xlu0 %2867, %v3655_v57  }
  0xbf   : > { %816 = vperm.xlu1 %2854, %v3592_v41   ;;  %675 = vperm.xlu0 %2867, %v3660_v58  }
  0xc3   : > { %2855 = vset.pattern.permute.xlu1 %v3230_v1  ;;  %2872 = vset.pattern.permute.xlu0 %v3229_v0 }
  0xc4   : > { %620 = vperm.xlu1 %2855, %v510_v59   ;;  %868 = vperm.xlu0 %2872, %v3660_v58  }
  0xc8   : > { %2857 = vset.pattern.permute.xlu1 %v3229_v0  ;;  %2875 = vset.pattern.permute.xlu0 %v3231_v60 }
  0xc9   : > { %824 = vperm.xlu1 %2857, %v510_v59   ;;  %1073 = vperm.xlu0 %2875, %v3461_v3  }
  0xcd   : > { %2858 = vset.pattern.permute.xlu1 %v3230_v1  ;;  %1077 = vperm.xlu0 %2875, %v3466_v4  }
  0xce   : > { %625 = vperm.xlu1 %2858, %v511_v61  }
  0xd1   : > { %2878 = vset.pattern.permute.xlu0 %v3232_v62 }
  0xd2   : > { %2859 = vset.pattern.permute.xlu1 %v3229_v0  ;;  %1281 = vperm.xlu0 %2878, %v3466_v4  }
  0xd3   : > { %828 = vperm.xlu1 %2859, %v511_v61  }
  0xd6   : > { %v749_v3 = vpop.permute.xlu1 %748  ;;  %v526_v6 = vpop.permute.xlu0 %525  ;;  %1297 = vperm.xlu0 %2878, %v3496_v13  }
  0xd7   : > { %832 = vperm.xlu1 %2859, %v3632_v52   ;;  %v875_v14 = vmul.f32 %v749_v3, %v427_v63  ;;  %v876_v15 = vmul.f32 %v749_v3, %v428_v5  ;;  %v683_v16 = vmul.f32 %v526_v6, %v363_v7  ;;  %v684_v4 = vmul.f32 %v526_v6, %v364_v8 }
  0xd9   : > { %v939_v27 = vadd.f32 %v875_v14, %v683_v16  ;;  %v940_v29 = vadd.f32 %v876_v15, %v684_v4  ;;  %v373_v16 = vld [vmem:[%s3434_s21 + $0x50] sm:$0xff]  ;;  %v374_v4 = vld [vmem:[%s3434_s21 + $0x58] sm:$0xff] }
  0xda   : > { %v753_v19 = vpop.permute.xlu1 %752  ;;  %v531_v20 = vpop.permute.xlu0 %530  ;;  %2883 = vset.pattern.permute.xlu0 %v3231_v60 }
  0xdb   : > { %v877_v21 = vmul.f32 %v753_v19, %v429_v9  ;;  %v878_v23 = vmul.f32 %v753_v19, %v430_v10  ;;  %v685_v24 = vmul.f32 %v531_v20, %v365_v11  ;;  %v686_v25 = vmul.f32 %v531_v20, %v366_v12  ;;  %2860 = vset.pattern.permute.xlu1 %v3230_v1  ;;  %v435_v11 = vld [vmem:[%s3441_s23 + $0x40] sm:$0xff]  ;;  %v436_v12 = vld [vmem:[%s3441_s23 + $0x48] sm:$0xff]  ;;  %v2966_v20 = vld [vmem:[%s4383_s6 + $0x70] ss:$8 sps:$4 sm:$0xff]  }
  0xdc   : > { %640 = vperm.xlu1 %2860, %v514_v18   ;;  %1089 = vperm.xlu0 %2883, %v3508_v17   ;;  %v369_v17 = vld [vmem:[%s3434_s21 + $0x30] sm:$0xff]  ;;  %v371_v19 = vld [vmem:[%s3434_s21 + $0x40] sm:$0xff] }
  0xdd   : > { %v941_v28 = vadd.f32 %v877_v21, %v685_v24  ;;  %v942_v30 = vadd.f32 %v878_v23, %v686_v25  ;;  %v372_v21 = vld [vmem:[%s3434_s21 + $0x48] sm:$0xff]  ;;  %v437_v23 = vld [vmem:[%s3441_s23 + $0x50] sm:$0xff]  ;;  %v438_v24 = vld [vmem:[%s3441_s23 + $0x58] sm:$0xff] }
  0xde   : > { %v536_v31 = vpop.permute.xlu0 %535 }
  0xdf   : > { %v541_v33 = vpop.permute.xlu1 %540  ;;  %v1004_v37 = vpack.c.bf16 %v942_v30, %v940_v29  ;;  %v1003_v38 = vpack.c.bf16 %v941_v28, %v939_v27  ;;  %v687_v43 = vmul.f32 %v536_v31, %v367_v34  ;;  %v688_v45 = vmul.f32 %v536_v31, %v368_v36  ;;  %v518_v29 = vld [vmem:[%s3453_s0 + $0xd8] sm:$0xff]  ;;  %v2967_v31 = vld [vmem:[%s4383_s6 + $0x64] ss:$8 sps:$4 sm:$0xff]  }
  0xe0   : > { %2862 = vset.pattern.permute.xlu1 %v3229_v0  ;;  %1093 = vperm.xlu0 %2883, %v3496_v13   ;;  %v689_v59 = vmul.f32 %v541_v33, %v369_v17  ;;  %v690_v13 = vmul.f32 %v541_v33, %v370_v42  ;;  %v439_v17 = vld [vmem:[%s3441_s23 + $0x60] sm:$0xff]  ;;  %v440_v42 = vld [vmem:[%s3441_s23 + $0x68] sm:$0xff] }
  0xe1   : > { %840 = vperm.xlu1 %2862, %v514_v18   ;;  %1731 = vmatprep.mubr.bf16.mxu0 %v1004_v37  ;;  %v2964_v18 = vld [vmem:[%s4383_s6 + $0x74] ss:$8 sps:$4 sm:$0xff]  }
  0xe2   : > { %1732 = vmatmul.mubr.bf16.vlgmr.msra.gmra.mxu0 %v1003_v38  ;;  %2180 = vmatprep.subr.bf16.mxu1 %v2964_v18  ;;  %v2969_v38 = vld [vmem:[%s4383_s6 + $0x60] ss:$8 sps:$4 sm:$0xff]  }
  0xe3   : > { %v757_v48 = vpop.permute.xlu0 %756  ;;  %2181 = vmatpush1.bf16.msra.mxu1 %v2966_v20  ;;  %v2978_v20 = vld [vmem:[%s4383_s6 + $0x30] ss:$8 sps:$4 sm:$0xff]  }
  0xe4   : > { %v761_v50 = vpop.permute.xlu1 %760  ;;  %v879_v53 = vmul.f32 %v757_v48, %v431_v39  ;;  %v880_v56 = vmul.f32 %v757_v48, %v432_v40  ;;  %1105 = vperm.xlu0 %2883, %v3527_v22   ;;  %2182 = vmatprep.subr.bf16.mxu1 %v2967_v31  ;;  %v376_v48 = vld [vmem:[%s3434_s21 + $0x68] sm:$0xff]  ;;  %v382_v31 = vld [vmem:[%s3434_s21 + $0x98] sm:$0xff] }
  0xe5   : > { %v881_v61 = vmul.f32 %v761_v50, %v433_v46  ;;  %v882_v63 = vmul.f32 %v761_v50, %v434_v47  ;;  %2863 = vset.pattern.permute.xlu1 %v3230_v1  ;;  %v375_v47 = vld [vmem:[%s3434_s21 + $0x60] sm:$0xff] }
  0xe6   : > { %v943_v3 = vadd.f32 %v879_v53, %v687_v43  ;;  %v944_v5 = vadd.f32 %v880_v56, %v688_v45  ;;  %645 = vperm.xlu1 %2863, %v515_v49  }
  0xe7   : > { %v945_v6 = vadd.f32 %v881_v61, %v689_v59  ;;  %v946_v7 = vadd.f32 %v882_v63, %v690_v13  ;;  %v773_v8 = vpop.permute.xlu0 %772  ;;  %2183 = vmatpush1.bf16.msra.mxu1 %v2969_v38  ;;  %v445_v38 = vld [vmem:[%s3441_s23 + $0x90] sm:$0xff] }
  0xe8   : > { %1109 = vperm.xlu0 %2883, %v3539_v26   ;;  %v887_v50 = vmul.f32 %v773_v8, %v439_v17  ;;  %v888_v13 = vmul.f32 %v773_v8, %v440_v42  ;;  %v2973_v8 = vld [vmem:[%s4383_s6 + $0x44] ss:$8 sps:$4 sm:$0xff]   ;;  %v446_v17 = vld [vmem:[%s3441_s23 + $0x98] sm:$0xff] }
  0xe9   : > { %v546_v9 = vpop.permute.xlu1 %545  ;;  %v1006_v22 = vpack.c.bf16 %v946_v7, %v944_v5  ;;  %v1005_v10 = vpack.c.bf16 %v945_v6, %v943_v3  ;;  %v377_v3 = vld [vmem:[%s3434_s21 + $0x70] sm:$0xff]  ;;  %v378_v5 = vld [vmem:[%s3434_s21 + $0x78] sm:$0xff] }
  0xea   : > { %2864 = vset.pattern.permute.xlu1 %v3229_v0  ;;  %v691_v33 = vmul.f32 %v546_v9, %v371_v19  ;;  %v692_v34 = vmul.f32 %v546_v9, %v372_v21  ;;  %v441_v6 = vld [vmem:[%s3441_s23 + $0x70] sm:$0xff]  ;;  %v442_v7 = vld [vmem:[%s3441_s23 + $0x78] sm:$0xff]  ;;  %v519_v9 = vld [vmem:[%s3453_s0 + $0xe0] sm:$0xff] }
  0xeb   : > { %844 = vperm.xlu1 %2864, %v515_v49   ;;  %1741 = vmatprep.mubr.bf16.mxu0 %v1006_v22  ;;  %v2970_v49 = vld [vmem:[%s4383_s6 + $0x54] ss:$8 sps:$4 sm:$0xff]   ;;  %v2975_v22 = vld [vmem:[%s4383_s6 + $0x40] ss:$8 sps:$4 sm:$0xff]  }
  0xec   : > { %1742 = vmatmul.mubr.bf16.gmra.mxu0 %v1005_v10  ;;  %2888 = vset.pattern.permute.xlu0 %v3232_v62  ;;  %v551_v15 = vpop.permute.xlu0 %550 }
  0xed   : > { %1313 = vperm.xlu0 %2888, %v3539_v26   ;;  %v693_v27 = vmul.f32 %v551_v15, %v373_v16  ;;  %v694_v28 = vmul.f32 %v551_v15, %v374_v4  ;;  %2184 = vmatprep.subr.bf16.mxu1 %v2970_v49 }
  0xee   : > { %v765_v14 = vpop.permute.xlu1 %764 }
  0xef   : > { %848 = vperm.xlu1 %2864, %v3640_v54   ;;  %v883_v26 = vmul.f32 %v765_v14, %v435_v11  ;;  %v884_v25 = vmul.f32 %v765_v14, %v436_v12 }
  0xf0   : > { %v556_v46 = vpop.permute.xlu0 %555 }
  0xf1   : > { %1329 = vperm.xlu0 %2888, %v3560_v32   ;;  %v947_v39 = vadd.f32 %v883_v26, %v691_v33  ;;  %v948_v40 = vadd.f32 %v884_v25, %v692_v34  ;;  %v695_v61 = vmul.f32 %v556_v46, %v375_v47  ;;  %v696_v63 = vmul.f32 %v556_v46, %v376_v48  ;;  %v2981_v25 = vld [vmem:[%s4383_s6 + $0x20] ss:$8 sps:$4 sm:$0xff]   ;;  %v2982_v33 = vld [vmem:[%s4383_s6 + $0x14] ss:$8 sps:$4 sm:$0xff]   ;;  %v2985_v48 = vld [vmem:[%s4383_s6 + $0x4] ss:$8 sps:$4 sm:$0xff]  }
  0xf2   : > { %v769_v30 = vpop.permute.xlu1 %768  ;;  %v379_v34 = vld [vmem:[%s3434_s21 + $0x80] sm:$0xff]  ;;  %v522_v46 = vld [vmem:[%s3453_s0 + $0xf8] sm:$0xff] }
  0xf3   : > { %v885_v36 = vmul.f32 %v769_v30, %v437_v23  ;;  %v886_v37 = vmul.f32 %v769_v30, %v438_v24  ;;  %2865 = vset.pattern.permute.xlu1 %v3230_v1  ;;  %v951_v11 = vadd.f32 %v887_v50, %v695_v61  ;;  %v952_v12 = vadd.f32 %v888_v13, %v696_v63  ;;  %v444_v30 = vld [vmem:[%s3441_s23 + $0x88] sm:$0xff] }
  0xf4   : > { %660 = vperm.xlu1 %2865, %v518_v29   ;;  %v571_v26 = vpop.permute.xlu0 %570  ;;  %v2987_v13 = vld [vmem:[%s4383_s6] ss:$8 sps:$4 sm:$0xff]  }
  0xf5   : > { %v949_v43 = vadd.f32 %v885_v36, %v693_v27  ;;  %v950_v45 = vadd.f32 %v886_v37, %v694_v28  ;;  %2893 = vset.pattern.permute.xlu0 %v3231_v60  ;;  %v443_v27 = vld [vmem:[%s3441_s23 + $0x80] sm:$0xff]  ;;  %v381_v28 = vld [vmem:[%s3434_s21 + $0x90] sm:$0xff]  ;;  %v380_v36 = vld [vmem:[%s3434_s21 + $0x88] sm:$0xff] }
  0xf6   : > { %1121 = vperm.xlu0 %2893, %v3571_v35   ;;  %v2972_v35 = vld [vmem:[%s4383_s6 + $0x50] ss:$8 sps:$4 sm:$0xff]  }
  0xf7   : > { %v561_v53 = vpop.permute.xlu1 %560  ;;  %v1008_v56 = vpack.c.bf16 %v950_v45, %v948_v40  ;;  %v1007_v59 = vpack.c.bf16 %v949_v43, %v947_v39  ;;  %2185 = vmatpush1.bf16.msra.mxu1 %v2972_v35  ;;  %v701_v39 = vmul.f32 %v571_v26, %v381_v28  ;;  %v2984_v40 = vld [vmem:[%s4383_s6 + $0x10] ss:$8 sps:$4 sm:$0xff]   ;;  %v702_v45 = vmul.f32 %v571_v26, %v382_v31 }
  0xf8   : > { %2868 = vset.pattern.permute.xlu1 %v3229_v0  ;;  %2186 = vmatprep.subr.bf16.mxu1 %v2973_v8  ;;  %v697_v14 = vmul.f32 %v561_v53, %v377_v3  ;;  %v698_v15 = vmul.f32 %v561_v53, %v378_v5  ;;  %v576_v37 = vpop.permute.xlu0 %575 }
  0xf9   : > { %856 = vperm.xlu1 %2868, %v518_v29   ;;  %1751 = vmatprep.mubr.bf16.mxu0 %v1008_v56 }
  0xfa   : > { %1752 = vmatmul.mubr.bf16.gmra.mxu0 %v1007_v59  ;;  %1125 = vperm.xlu0 %2893, %v3560_v32   ;;  %v2976_v32 = vld [vmem:[%s4383_s6 + $0x34] ss:$8 sps:$4 sm:$0xff]   ;;  %v383_v59 = vld [vmem:[%s3434_s21 + $0xa0] sm:$0xff] }
  0xfb   : > { %2187 = vmatpush1.bf16.msra.mxu1 %v2975_v22 }
  0xfc   : > { %v777_v10 = vpop.permute.xlu1 %776  ;;  %2188 = vmatprep.subr.bf16.mxu1 %v2976_v32  ;;  %v449_v32 = vld [vmem:[%s3441_s23 + $0xb0] sm:$0xff] }
  0xfd   : > { %v889_v16 = vmul.f32 %v777_v10, %v441_v6  ;;  %v890_v4 = vmul.f32 %v777_v10, %v442_v7  ;;  %2869 = vset.pattern.permute.xlu1 %v3230_v1  ;;  %v789_v5 = vpop.permute.xlu0 %788  ;;  %v447_v6 = vld [vmem:[%s3441_s23 + $0xa0] sm:$0xff]  ;;  %v448_v7 = vld [vmem:[%s3441_s23 + $0xa8] sm:$0xff] }
  0xfe   : > { %665 = vperm.xlu1 %2869, %v519_v9   ;;  %1137 = vperm.xlu0 %2893, %v3592_v41   ;;  %v2979_v41 = vld [vmem:[%s4383_s6 + $0x24] ss:$8 sps:$4 sm:$0xff]  }
  0xff   : > { %v953_v18 = vadd.f32 %v889_v16, %v697_v14  ;;  %v954_v19 = vadd.f32 %v890_v4, %v698_v15  ;;  %2189 = vmatpush1.bf16.msra.mxu1 %v2978_v20  ;;  %v896_v14 = vmul.f32 %v789_v5, %v448_v7  ;;  %v2990_v15 = vld [vmem:[%s4383_s6 + $0xf0] ss:$8 sps:$4 sm:$0xff]  }
 0x100   : > { %2190 = vmatprep.subr.bf16.mxu1 %v2979_v41  ;;  %v385_v16 = vld [vmem:[%s3434_s21 + $0xb0] sm:$0xff]  ;;  %v386_v4 = vld [vmem:[%s3434_s21 + $0xb8] sm:$0xff] }
 0x101   : > { %v566_v21 = vpop.permute.xlu1 %565  ;;  %v1010_v23 = vpack.c.bf16 %v954_v19, %v952_v12  ;;  %v1009_v24 = vpack.c.bf16 %v953_v18, %v951_v11  ;;  %v895_v12 = vmul.f32 %v789_v5, %v447_v6  ;;  %v450_v18 = vld [vmem:[%s3441_s23 + $0xb8] sm:$0xff]  ;;  %v3005_v6 = vld [vmem:[%s4383_s6 + $0xa0] ss:$8 sps:$4 sm:$0xff]  }
 0x102   : > { %2870 = vset.pattern.permute.xlu1 %v3229_v0  ;;  %1141 = vperm.xlu0 %2893, %v3603_v44   ;;  %v699_v49 = vmul.f32 %v566_v21, %v379_v34  ;;  %v700_v50 = vmul.f32 %v566_v21, %v380_v36  ;;  %v2997_v36 = vld [vmem:[%s4383_s6 + $0xc4] ss:$8 sps:$4 sm:$0xff]   ;;  %v3013_v5 = vld [vmem:[%s3453_s0 + $0x18] sm:$0xff] }
 0x103   : > { %860 = vperm.xlu1 %2870, %v519_v9   ;;  %1761 = vmatprep.mubr.bf16.mxu0 %v1010_v23  ;;  %v703_v9 = vmul.f32 %v576_v37, %v383_v59 }
 0x104   : > { %1762 = vmatmul.mubr.bf16.gmra.mxu0 %v1009_v24  ;;  %2191 = vmatpush1.bf16.msra.mxu1 %v2981_v25  ;;  %v2993_v24 = vld [vmem:[%s4383_s6 + $0xe0] ss:$8 sps:$4 sm:$0xff]  }
 0x105   : > { %2192 = vmatprep.subr.bf16.mxu1 %v2982_v33  ;;  %v959_v21 = vadd.f32 %v895_v12, %v703_v9  ;;  %v392_v12 = vld [vmem:[%s3434_s21 + $0xe8] sm:$0xff] }
 0x106   : > { %v781_v29 = vpop.permute.xlu1 %780  ;;  %2898 = vset.pattern.permute.xlu0 %v3232_v62 }
 0x107   : > { %864 = vperm.xlu1 %2870, %v3655_v57   ;;  %v891_v42 = vmul.f32 %v781_v29, %v443_v27  ;;  %v892_v43 = vmul.f32 %v781_v29, %v444_v30  ;;  %1345 = vperm.xlu0 %2898, %v3603_v44   ;;  %v384_v44 = vld [vmem:[%s3434_s21 + $0xa8] sm:$0xff]  ;;  %v2994_v27 = vld [vmem:[%s4383_s6 + $0xd4] ss:$8 sps:$4 sm:$0xff]   ;;  %v3827_v30 = vpop.permute.xlu0 %804 }
 0x108   : > { %2193 = vmatpush1.bf16.msra.mxu1 %v2984_v40  ;;  %v704_v11 = vmul.f32 %v576_v37, %v384_v44  ;;  %v451_v37 = vld [vmem:[%s3441_s23 + $0xc0] sm:$0xff] }
 0x109   : > { %v955_v61 = vadd.f32 %v891_v42, %v699_v49  ;;  %v956_v63 = vadd.f32 %v892_v43, %v700_v50  ;;  %2194 = vmatprep.subr.bf16.mxu1 %v2985_v48  ;;  %v390_v42 = vld [vmem:[%s3434_s21 + $0xd8] sm:$0xff]  ;;  %v387_v43 = vld [vmem:[%s3434_s21 + $0xc0] sm:$0xff] }
 0x10a   : > { %v785_v47 = vpop.permute.xlu1 %784  ;;  %v960_v23 = vadd.f32 %v896_v14, %v704_v11  ;;  %v454_v48 = vld [vmem:[%s3441_s23 + $0xd8] sm:$0xff]  ;;  %v455_v44 = vld [vmem:[%s3441_s23 + $0xe0] sm:$0xff] }
 0x10b   : > { %v893_v53 = vmul.f32 %v785_v47, %v445_v38  ;;  %v894_v56 = vmul.f32 %v785_v47, %v446_v17  ;;  %2871 = vset.pattern.permute.xlu1 %v3230_v1  ;;  %v2988_v1 = vld [vmem:[%s4383_s6 + $0xf4] ss:$8 sps:$4 sm:$0xff]   ;;  %1361 = vperm.xlu0 %2898, %v3627_v51   ;;  %v591_v40 = vpop.permute.xlu0 %590  ;;  %v3002_v49 = vld [vmem:[%s4383_s6 + $0xb0] ss:$8 sps:$4 sm:$0xff]   ;;  %v391_v11 = vld [vmem:[%s3434_s21 + $0xe0] sm:$0xff] }
 0x10c   : > { %680 = vperm.xlu1 %2871, %v522_v46   ;;  %2195 = vmatpush1.bf16.msra.mxu1 %v2987_v13  ;;  %v3000_v38 = vld [vmem:[%s4383_s6 + $0xb4] ss:$8 sps:$4 sm:$0xff]  }
 0x10d   : > { %v957_v35 = vadd.f32 %v893_v53, %v701_v39  ;;  %v958_v3 = vadd.f32 %v894_v56, %v702_v45  ;;  %2196 = vmatprep.subr.bf16.mxu1 %v2988_v1  ;;  %v452_v39 = vld [vmem:[%s3441_s23 + $0xc8] sm:$0xff]  ;;  %v453_v47 = vld [vmem:[%s3441_s23 + $0xd0] sm:$0xff]  ;;  %v710_v56 = vmul.f32 %v591_v40, %v390_v42  ;;  %v398_v42 = vld [vmem:[%s3434_s21 + $0x118] sm:$0xff] }
 0x10e   : > { %v388_v45 = vld [vmem:[%s3434_s21 + $0xc8] sm:$0xff]  ;;  %v3006_v14 = vld [vmem:[%s4383_s6 + $0x94] ss:$8 sps:$4 sm:$0xff]  }
 0x10f   : > { %v581_v8 = vpop.permute.xlu1 %580  ;;  %v1012_v22 = vpack.c.bf16 %v958_v3, %v956_v63  ;;  %v1011_v10 = vpack.c.bf16 %v957_v35, %v955_v61  ;;  %2903 = vset.pattern.permute.xlu0 %v3231_v60  ;;  %v3003_v61 = vld [vmem:[%s4383_s6 + $0xa4] ss:$8 sps:$4 sm:$0xff]  }
 0x110   : > { %2873 = vset.pattern.permute.xlu1 %v3229_v0  ;;  %v2991_v0 = vld [vmem:[%s4383_s6 + $0xe4] ss:$8 sps:$4 sm:$0xff]   ;;  %v705_v19 = vmul.f32 %v581_v8, %v385_v16  ;;  %2197 = vmatpush2.bf16.msra.mxu1 %v2990_v15  ;;  %v706_v41 = vmul.f32 %v581_v8, %v386_v4  ;;  %v903_v15 = vmul.f32 %v3827_v30, %v455_v44 }
 0x111   : > { %872 = vperm.xlu1 %2873, %v522_v46   ;;  %1771 = vmatprep.mubr.bf16.mxu0 %v1012_v22  ;;  %v3012_v46 = vld [vmem:[%s3453_s0 + $0x8] sm:$0xff]  ;;  %v399_v44 = vld [vmem:[%s3434_s21 + $0x120] sm:$0xff] }
 0x112   : > { %1772 = vmatmul.mubr.bf16.gmra.mxu0 %v1011_v10  ;;  %1153 = vperm.xlu0 %2903, %v3632_v52   ;;  %v2996_v52 = vld [vmem:[%s4383_s6 + $0xd0] ss:$8 sps:$4 sm:$0xff]   ;;  %v456_v8 = vld [vmem:[%s3441_s23 + $0xe8] sm:$0xff]  ;;  %v596_v10 = vpop.permute.xlu0 %595 }
 0x113   : > { %2198 = vmatprep.subr.bf16.mxu1 %v2991_v0  ;;  %v711_v0 = vmul.f32 %v596_v10, %v391_v11 }
 0x114   : > { %v793_v20 = vpop.permute.xlu1 %792  ;;  %2199 = vmatpush2.bf16.msra.mxu1 %v2993_v24  ;;  %v457_v24 = vld [vmem:[%s3441_s23 + $0xf0] sm:$0xff] }
 0x115   : > { %v897_v26 = vmul.f32 %v793_v20, %v449_v32  ;;  %v898_v25 = vmul.f32 %v793_v20, %v450_v18  ;;  %2874 = vset.pattern.permute.xlu1 %v3231_v60  ;;  %2200 = vmatprep.subr.bf16.mxu1 %v2994_v27  ;;  %v904_v18 = vmul.f32 %v3827_v30, %v456_v8  ;;  %v3008_v20 = vld [vmem:[%s4383_s6 + $0x90] ss:$8 sps:$4 sm:$0xff]   ;;  %v3011_v30 = vld [vmem:[%s4383_s6 + $0x80] ss:$8 sps:$4 sm:$0xff]  }
 0x116   : > { %1069 = vperm.xlu1 %2874, %v3456_v2   ;;  %1157 = vperm.xlu0 %2903, %v3627_v51   ;;  %v2999_v51 = vld [vmem:[%s4383_s6 + $0xc0] ss:$8 sps:$4 sm:$0xff]  }
 0x117   : > { %v961_v28 = vadd.f32 %v897_v26, %v705_v19  ;;  %v962_v29 = vadd.f32 %v898_v25, %v706_v41  ;;  %v712_v19 = vmul.f32 %v596_v10, %v392_v12  ;;  %v458_v41 = vld [vmem:[%s3441_s23 + $0xf8] sm:$0xff]  ;;  %v3009_v26 = vld [vmem:[%s4383_s6 + $0x84] ss:$8 sps:$4 sm:$0xff]  }
 0x118   : > { %2201 = vmatpush2.bf16.msra.mxu1 %v2996_v52  ;;  %v400_v8 = vld [vmem:[%s3434_s21 + $0x128] sm:$0xff] }
 0x119   : > { %v586_v31 = vpop.permute.xlu1 %585  ;;  %v1014_v33 = vpack.c.bf16 %v962_v29, %v960_v23  ;;  %v1013_v34 = vpack.c.bf16 %v961_v28, %v959_v21  ;;  %2202 = vmatprep.subr.bf16.mxu1 %v2997_v36  ;;  %v393_v21 = vld [vmem:[%s3434_s21 + $0xf0] sm:$0xff]  ;;  %v394_v23 = vld [vmem:[%s3434_s21 + $0xf8] sm:$0xff]  ;;  %v967_v28 = vadd.f32 %v903_v15, %v711_v0  ;;  %v968_v29 = vadd.f32 %v904_v18, %v712_v19 }
 0x11a   : > { %2876 = vset.pattern.permute.xlu1 %v3232_v62  ;;  %1169 = vperm.xlu0 %2903, %v3640_v54   ;;  %v707_v59 = vmul.f32 %v586_v31, %v387_v43  ;;  %v708_v63 = vmul.f32 %v586_v31, %v388_v45  ;;  %v395_v43 = vld [vmem:[%s3434_s21 + $0x100] sm:$0xff]  ;;  %v3015_v45 = vld [vmem:[%s3453_s0 + $0x28] sm:$0xff]  ;;  %v402_v18 = vld [vmem:[%s3434_s21 + $0x138] sm:$0xff] }
 0x11b   : > { %1781 = vmatprep.mubr.bf16.mxu0 %v1014_v33  ;;  %1273 = vperm.xlu1 %2876, %v3456_v2   ;;  %v389_v2 = vld [vmem:[%s3434_s21 + $0xd0] sm:$0xff]  ;;  %v466_v19 = vld [vmem:[%s3441_s23 + $0x138] sm:$0xff] }
 0x11c   : > { %1782 = vmatmul.mubr.bf16.gmra.mxu0 %v1013_v34  ;;  %2203 = vmatpush2.bf16.msra.mxu1 %v2999_v51  ;;  %v709_v53 = vmul.f32 %v591_v40, %v389_v2  ;;  %v3014_v34 = vld [vmem:[%s3453_s0 + $0x20] sm:$0xff]  ;;  %v397_v2 = vld [vmem:[%s3434_s21 + $0x110] sm:$0xff] }
 0x11d   : > { %2204 = vmatprep.subr.bf16.mxu1 %v3000_v38  ;;  %v465_v0 = vld [vmem:[%s3441_s23 + $0x130] sm:$0xff] }
 0x11e   : > { %v797_v17 = vpop.permute.xlu1 %796  ;;  %2908 = vset.pattern.permute.xlu0 %v3232_v62 }
 0x11f   : > { %1277 = vperm.xlu1 %2876, %v3012_v46   ;;  %v899_v50 = vmul.f32 %v797_v17, %v451_v37  ;;  %v900_v54 = vmul.f32 %v797_v17, %v452_v39  ;;  %1377 = vperm.xlu0 %2908, %v3645_v55   ;;  %v611_v17 = vpop.permute.xlu0 %610  ;;  %v459_v39 = vld [vmem:[%s3441_s23 + $0x100] sm:$0xff] }
 0x120   : > { %2205 = vmatpush2.bf16.msra.mxu1 %v3002_v49  ;;  %v462_v49 = vld [vmem:[%s3441_s23 + $0x118] sm:$0xff] }
 0x121   : > { %v963_v7 = vadd.f32 %v899_v50, %v707_v59  ;;  %v964_v1 = vadd.f32 %v900_v54, %v708_v63  ;;  %2206 = vmatprep.subr.bf16.mxu1 %v3003_v61 }
 0x122   : > { %v801_v13 = vpop.permute.xlu1 %800 }
 0x123   : > { %v901_v35 = vmul.f32 %v801_v13, %v453_v47  ;;  %v902_v3 = vmul.f32 %v801_v13, %v454_v48  ;;  %2877 = vset.pattern.permute.xlu1 %v3231_v60  ;;  %2909 = vset.pattern.permute.xlu0 %v3231_v60  ;;  %v616_v46 = vpop.permute.xlu0 %615  ;;  %v396_v47 = vld [vmem:[%s3434_s21 + $0x108] sm:$0xff]  ;;  %v461_v48 = vld [vmem:[%s3441_s23 + $0x110] sm:$0xff] }
 0x124   : > { %1081 = vperm.xlu1 %2877, %v3013_v5   ;;  %2207 = vmatpush2.bf16.msra.mxu1 %v3005_v6  ;;  %v720_v15 = vmul.f32 %v616_v46, %v400_v8 }
 0x125   : > { %v965_v9 = vadd.f32 %v901_v35, %v709_v53  ;;  %v966_v22 = vadd.f32 %v902_v3, %v710_v56  ;;  %2208 = vmatprep.subr.bf16.mxu1 %v3006_v14  ;;  %1173 = vperm.xlu0 %2909, %v3645_v55   ;;  %v717_v53 = vmul.f32 %v611_v17, %v397_v2  ;;  %v3016_v3 = vld [vmem:[%s3453_s0 + $0x38] sm:$0xff] }
 0x126   : > { %v718_v56 = vmul.f32 %v611_v17, %v398_v42  ;;  %v719_v14 = vmul.f32 %v616_v46, %v399_v44  ;;  %v403_v17 = vld [vmem:[%s3434_s21 + $0x140] sm:$0xff]  ;;  %v470_v2 = vld [vmem:[%s3441_s23 + $0x158] sm:$0xff] }
 0x127   : > { %v601_v16 = vpop.permute.xlu1 %600  ;;  %v1016_v4 = vpack.c.bf16 %v966_v22, %v964_v1  ;;  %v1015_v32 = vpack.c.bf16 %v965_v9, %v963_v7  ;;  %v463_v9 = vld [vmem:[%s3441_s23 + $0x120] sm:$0xff]  ;;  %v464_v22 = vld [vmem:[%s3441_s23 + $0x128] sm:$0xff] }
 0x128   : > { %2879 = vset.pattern.permute.xlu1 %v3232_v62  ;;  %v713_v25 = vmul.f32 %v601_v16, %v393_v21  ;;  %2209 = vmatpush2.bf16.msra.mxu1 %v3008_v20  ;;  %v714_v52 = vmul.f32 %v601_v16, %v394_v23  ;;  %v407_v44 = vld [vmem:[%s3434_s21 + $0x160] sm:$0xff] }
 0x129   : > { %1791 = vmatprep.mubr.bf16.mxu0 %v1016_v4  ;;  %1285 = vperm.xlu1 %2879, %v3013_v5  }
 0x12a   : > { %1792 = vmatmul.mubr.bf16.gmra.mxu0 %v1015_v32  ;;  %2210 = vmatprep.subr.bf16.mxu1 %v3009_v26  ;;  %v401_v32 = vld [vmem:[%s3434_s21 + $0x130] sm:$0xff] }
 0x12b   : > { %1185 = vperm.xlu0 %2909, %v3655_v57   ;;  %v460_v57 = vld [vmem:[%s3441_s23 + $0x108] sm:$0xff] }
 0x12c   : > { %v809_v27 = vpop.permute.xlu1 %808  ;;  %2211 = vmatpush2.bf16.msra.mxu1 %v3011_v30 }
 0x12d   : > { %v905_v31 = vmul.f32 %v809_v27, %v457_v24  ;;  %v906_v33 = vmul.f32 %v809_v27, %v458_v41  ;;  %2880 = vset.pattern.permute.xlu1 %v3231_v60  ;;  %v3017_v27 = vld [vmem:[%s3453_s0 + $0x40] sm:$0xff] }
 0x12e   : > { %1085 = vperm.xlu1 %2880, %v3014_v34  }
 0x12f   : > { %v969_v55 = vadd.f32 %v905_v31, %v713_v25  ;;  %v970_v36 = vadd.f32 %v906_v33, %v714_v52  ;;  %1189 = vperm.xlu0 %2909, %v3660_v58  }
 0x131   : > { %v606_v51 = vpop.permute.xlu1 %605  ;;  %v1018_v37 = vpack.c.bf16 %v970_v36, %v968_v29  ;;  %v1017_v38 = vpack.c.bf16 %v969_v55, %v967_v28  ;;  %v468_v36 = vld [vmem:[%s3441_s23 + $0x148] sm:$0xff] }
 0x132   : > { %2881 = vset.pattern.permute.xlu1 %v3232_v62  ;;  %v715_v13 = vmul.f32 %v606_v51, %v395_v43  ;;  %v716_v61 = vmul.f32 %v606_v51, %v396_v47 }
 0x133   : > { %1801 = vmatprep.mubr.bf16.mxu0 %v1018_v37  ;;  %1289 = vperm.xlu1 %2881, %v3014_v34   ;;  %v467_v34 = vld [vmem:[%s3441_s23 + $0x140] sm:$0xff]  ;;  %v405_v37 = vld [vmem:[%s3434_s21 + $0x150] sm:$0xff] }
 0x134   : > { %1802 = vmatmul.mubr.bf16.gmra.mxu0 %v1017_v38  ;;  %2914 = vset.pattern.permute.xlu0 %v3232_v62  ;;  %v406_v38 = vld [vmem:[%s3434_s21 + $0x158] sm:$0xff] }
 0x135   : > { %1393 = vperm.xlu0 %2914, %v3660_v58   ;;  %v821_v58 = vpop.permute.xlu0 %820 }
 0x136   : > { %v813_v40 = vpop.permute.xlu1 %812  ;;  %v911_v16 = vmul.f32 %v821_v58, %v463_v9  ;;  %v912_v4 = vmul.f32 %v821_v58, %v464_v22 }
 0x137   : > { %1293 = vperm.xlu1 %2881, %v3015_v45   ;;  %v907_v50 = vmul.f32 %v813_v40, %v459_v39  ;;  %v908_v54 = vmul.f32 %v813_v40, %v460_v57  ;;  %v3018_v39 = vld [vmem:[%s3453_s0 + $0x48] sm:$0xff]  ;;  %v469_v57 = vld [vmem:[%s3441_s23 + $0x150] sm:$0xff] }
 0x138   : > { %v975_v21 = vadd.f32 %v911_v16, %v719_v14  ;;  %v976_v23 = vadd.f32 %v912_v4, %v720_v15  ;;  %v404_v40 = vld [vmem:[%s3434_s21 + $0x148] sm:$0xff]  ;;  %v474_v14 = vld [vmem:[%s3441_s23 + $0x178] sm:$0xff] }
 0x139   : > { %v971_v5 = vadd.f32 %v907_v50, %v715_v13  ;;  %v972_v6 = vadd.f32 %v908_v54, %v716_v61  ;;  %v837_v30 = vpop.permute.xlu0 %836  ;;  %v472_v61 = vld [vmem:[%s3441_s23 + $0x168] sm:$0xff] }
 0x13a   : > { %v817_v59 = vpop.permute.xlu1 %816  ;;  %v920_v58 = vmul.f32 %v837_v30, %v472_v61 }
 0x13b   : > { %v909_v63 = vmul.f32 %v817_v59, %v461_v48  ;;  %v910_v35 = vmul.f32 %v817_v59, %v462_v49  ;;  %2882 = vset.pattern.permute.xlu1 %v3231_v60 }
 0x13c   : > { %1097 = vperm.xlu1 %2882, %v3016_v3  }
 0x13d   : > { %v973_v7 = vadd.f32 %v909_v63, %v717_v53  ;;  %v974_v1 = vadd.f32 %v910_v35, %v718_v56  ;;  %v631_v51 = vpop.permute.xlu0 %630  ;;  %v471_v53 = vld [vmem:[%s3441_s23 + $0x160] sm:$0xff]  ;;  %v3019_v56 = vld [vmem:[%s3453_s0 + $0x58] sm:$0xff] }
 0x13e   : > { %v725_v45 = vmul.f32 %v631_v51, %v405_v37  ;;  %v726_v46 = vmul.f32 %v631_v51, %v406_v38  ;;  %v919_v8 = vmul.f32 %v837_v30, %v471_v53  ;;  %v411_v30 = vld [vmem:[%s3434_s21 + $0x180] sm:$0xff] }
 0x13f   : > { %v621_v10 = vpop.permute.xlu1 %620  ;;  %v1020_v11 = vpack.c.bf16 %v974_v1, %v972_v6  ;;  %v1019_v12 = vpack.c.bf16 %v973_v7, %v971_v5  ;;  %v408_v5 = vld [vmem:[%s3434_s21 + $0x168] sm:$0xff]  ;;  %v415_v53 = vld [vmem:[%s3434_s21 + $0x1a0] sm:$0xff] }
 0x140   : > { %2884 = vset.pattern.permute.xlu1 %v3232_v62  ;;  %v721_v24 = vmul.f32 %v621_v10, %v401_v32  ;;  %v722_v41 = vmul.f32 %v621_v10, %v402_v18  ;;  %v409_v10 = vld [vmem:[%s3434_s21 + $0x170] sm:$0xff] }
 0x141   : > { %1811 = vmatprep.mubr.bf16.mxu0 %v1020_v11  ;;  %1301 = vperm.xlu1 %2884, %v3016_v3   ;;  %v636_v3 = vpop.permute.xlu0 %635  ;;  %v410_v11 = vld [vmem:[%s3434_s21 + $0x178] sm:$0xff] }
 0x142   : > { %1812 = vmatmul.mubr.bf16.gmra.mxu0 %v1019_v12  ;;  %v727_v9 = vmul.f32 %v636_v3, %v407_v44  ;;  %v728_v22 = vmul.f32 %v636_v3, %v408_v5  ;;  %v473_v12 = vld [vmem:[%s3441_s23 + $0x170] sm:$0xff] }
 0x144   : > { %v825_v20 = vpop.permute.xlu1 %824  ;;  %v983_v15 = vadd.f32 %v919_v8, %v727_v9  ;;  %v984_v16 = vadd.f32 %v920_v58, %v728_v22  ;;  %v482_v8 = vld [vmem:[%s3441_s23 + $0x1b8] sm:$0xff] }
 0x145   : > { %v913_v26 = vmul.f32 %v825_v20, %v465_v0  ;;  %v914_v25 = vmul.f32 %v825_v20, %v466_v19  ;;  %2885 = vset.pattern.permute.xlu1 %v3231_v60  ;;  %v3020_v20 = vld [vmem:[%s3453_s0 + $0x60] sm:$0xff] }
 0x146   : > { %1101 = vperm.xlu1 %2885, %v3017_v27  }
 0x147   : > { %v977_v28 = vadd.f32 %v913_v26, %v721_v24  ;;  %v978_v29 = vadd.f32 %v914_v25, %v722_v41  ;;  %v651_v25 = vpop.permute.xlu0 %650 }
 0x149   : > { %v626_v52 = vpop.permute.xlu1 %625  ;;  %v1022_v31 = vpack.c.bf16 %v978_v29, %v976_v23  ;;  %v1021_v33 = vpack.c.bf16 %v977_v28, %v975_v21  ;;  %v475_v28 = vld [vmem:[%s3441_s23 + $0x180] sm:$0xff]  ;;  %v476_v29 = vld [vmem:[%s3441_s23 + $0x188] sm:$0xff] }
 0x14a   : > { %2886 = vset.pattern.permute.xlu1 %v3232_v62  ;;  %v723_v48 = vmul.f32 %v626_v52, %v403_v17  ;;  %v724_v49 = vmul.f32 %v626_v52, %v404_v40  ;;  %v413_v52 = vld [vmem:[%s3434_s21 + $0x190] sm:$0xff] }
 0x14b   : > { %1821 = vmatprep.mubr.bf16.mxu0 %v1022_v31  ;;  %1305 = vperm.xlu1 %2886, %v3017_v27   ;;  %v414_v31 = vld [vmem:[%s3434_s21 + $0x198] sm:$0xff]  ;;  %v853_v38 = vpop.permute.xlu0 %852  ;;  %v733_v17 = vmul.f32 %v651_v25, %v413_v52 }
 0x14c   : > { %1822 = vmatmul.mubr.bf16.gmra.mxu0 %v1021_v33  ;;  %v3021_v33 = vld [vmem:[%s3453_s0 + $0x68] sm:$0xff] }
 0x14e   : > { %v829_v55 = vpop.permute.xlu1 %828 }
 0x14f   : > { %1309 = vperm.xlu1 %2886, %v3018_v39   ;;  %v915_v42 = vmul.f32 %v829_v55, %v467_v34  ;;  %v916_v43 = vmul.f32 %v829_v55, %v468_v36  ;;  %v412_v34 = vld [vmem:[%s3434_s21 + $0x188] sm:$0xff]  ;;  %v477_v55 = vld [vmem:[%s3441_s23 + $0x190] sm:$0xff]  ;;  %v478_v36 = vld [vmem:[%s3441_s23 + $0x198] sm:$0xff]  ;;  %v734_v39 = vmul.f32 %v651_v25, %v414_v31 }
 0x150   : > { %v3024_v25 = vld [vmem:[%s3453_s0 + $0x88] sm:$0xff] }
 0x151   : > { %v979_v59 = vadd.f32 %v915_v42, %v723_v48  ;;  %v980_v13 = vadd.f32 %v916_v43, %v724_v49 }
 0x152   : > { %v833_v47 = vpop.permute.xlu1 %832 }
 0x153   : > { %v917_v50 = vmul.f32 %v833_v47, %v469_v57  ;;  %v918_v54 = vmul.f32 %v833_v47, %v470_v2  ;;  %2887 = vset.pattern.permute.xlu1 %v3231_v60 }
 0x154   : > { %1113 = vperm.xlu1 %2887, %v3019_v56  }
 0x155   : > { %v981_v63 = vadd.f32 %v917_v50, %v725_v45  ;;  %v982_v35 = vadd.f32 %v918_v54, %v726_v46  ;;  %v479_v45 = vld [vmem:[%s3441_s23 + $0x1a0] sm:$0xff]  ;;  %v3022_v46 = vld [vmem:[%s3453_s0 + $0x78] sm:$0xff]  ;;  %v480_v54 = vld [vmem:[%s3441_s23 + $0x1a8] sm:$0xff] }
 0x156   : > { %v928_v3 = vmul.f32 %v853_v38, %v480_v54  ;;  %v425_v54 = vld [vmem:[%s3434_s21 + $0x1f0] sm:$0xff] }
 0x157   : > { %v641_v6 = vpop.permute.xlu1 %640  ;;  %v1024_v7 = vpack.c.bf16 %v982_v35, %v980_v13  ;;  %v1023_v1 = vpack.c.bf16 %v981_v63, %v979_v59  ;;  %v656_v13 = vpop.permute.xlu0 %655  ;;  %v927_v35 = vmul.f32 %v853_v38, %v479_v45 }
 0x158   : > { %2889 = vset.pattern.permute.xlu1 %v3232_v62  ;;  %v729_v32 = vmul.f32 %v641_v6, %v409_v10  ;;  %v730_v18 = vmul.f32 %v641_v6, %v410_v11  ;;  %v735_v44 = vmul.f32 %v656_v13, %v415_v53  ;;  %v417_v6 = vld [vmem:[%s3434_s21 + $0x1b0] sm:$0xff]  ;;  %v426_v53 = vld [vmem:[%s3434_s21 + $0x1f8] sm:$0xff] }
 0x159   : > { %1831 = vmatprep.mubr.bf16.mxu0 %v1024_v7  ;;  %1317 = vperm.xlu1 %2889, %v3019_v56   ;;  %v416_v56 = vld [vmem:[%s3434_s21 + $0x1a8] sm:$0xff]  ;;  %v418_v7 = vld [vmem:[%s3434_s21 + $0x1b8] sm:$0xff] }
 0x15a   : > { %1832 = vmatmul.mubr.bf16.gmra.mxu0 %v1023_v1  ;;  %v736_v5 = vmul.f32 %v656_v13, %v416_v56  ;;  %v481_v1 = vld [vmem:[%s3441_s23 + $0x1b0] sm:$0xff]  ;;  %v991_v58 = vadd.f32 %v927_v35, %v735_v44 }
 0x15b   : > { %v489_v56 = vld [vmem:[%s3441_s23 + $0x1f0] sm:$0xff] }
 0x15c   : > { %v841_v4 = vpop.permute.xlu1 %840  ;;  %v992_v9 = vadd.f32 %v928_v3, %v736_v5 }
 0x15d   : > { %v921_v0 = vmul.f32 %v841_v4, %v473_v12  ;;  %v922_v19 = vmul.f32 %v841_v4, %v474_v14  ;;  %2890 = vset.pattern.permute.xlu1 %v3231_v60 }
 0x15e   : > { %1117 = vperm.xlu1 %2890, %v3020_v20  }
 0x15f   : > { %v985_v21 = vadd.f32 %v921_v0, %v729_v32  ;;  %v986_v23 = vadd.f32 %v922_v19, %v730_v18  ;;  %v671_v19 = vpop.permute.xlu0 %670 }
 0x161   : > { %v646_v24 = vpop.permute.xlu1 %645  ;;  %v1026_v41 = vpack.c.bf16 %v986_v23, %v984_v16  ;;  %v1025_v26 = vpack.c.bf16 %v985_v21, %v983_v15  ;;  %v3023_v15 = vld [vmem:[%s3453_s0 + $0x80] sm:$0xff]  ;;  %v484_v23 = vld [vmem:[%s3441_s23 + $0x1c8] sm:$0xff] }
 0x162   : > { %2891 = vset.pattern.permute.xlu1 %v3232_v62  ;;  %v731_v57 = vmul.f32 %v646_v24, %v411_v30  ;;  %v732_v2 = vmul.f32 %v646_v24, %v412_v34  ;;  %v483_v21 = vld [vmem:[%s3441_s23 + $0x1c0] sm:$0xff]  ;;  %v421_v24 = vld [vmem:[%s3434_s21 + $0x1d0] sm:$0xff] }
 0x163   : > { %1841 = vmatprep.mubr.bf16.mxu0 %v1026_v41  ;;  %1321 = vperm.xlu1 %2891, %v3020_v20   ;;  %v422_v41 = vld [vmem:[%s3434_s21 + $0x1d8] sm:$0xff]  ;;  %v741_v31 = vmul.f32 %v671_v19, %v421_v24  ;;  %v676_v34 = vpop.permute.xlu0 %675 }
 0x164   : > { %1842 = vmatmul.mubr.bf16.gmra.mxu0 %v1025_v26  ;;  %v419_v26 = vld [vmem:[%s3434_s21 + $0x1c0] sm:$0xff] }
 0x166   : > { %v845_v27 = vpop.permute.xlu1 %844 }
 0x167   : > { %1325 = vperm.xlu1 %2891, %v3021_v33   ;;  %v923_v51 = vmul.f32 %v845_v27, %v475_v28  ;;  %v924_v37 = vmul.f32 %v845_v27, %v476_v29  ;;  %v420_v27 = vld [vmem:[%s3434_s21 + $0x1c8] sm:$0xff]  ;;  %v485_v28 = vld [vmem:[%s3441_s23 + $0x1d0] sm:$0xff]  ;;  %v486_v29 = vld [vmem:[%s3441_s23 + $0x1d8] sm:$0xff]  ;;  %v742_v33 = vmul.f32 %v671_v19, %v422_v41 }
 0x168   : > { %v1271_v19 = vld [vmem:[%s4382_s5] sm:$0x3] }
 0x169   : > { %v987_v47 = vadd.f32 %v923_v51, %v731_v57  ;;  %v988_v48 = vadd.f32 %v924_v37, %v732_v2 }
 0x16a   : > { %v849_v40 = vpop.permute.xlu1 %848 }
 0x16b   : > { %v925_v42 = vmul.f32 %v849_v40, %v477_v55  ;;  %v926_v43 = vmul.f32 %v849_v40, %v478_v36  ;;  %2892 = vset.pattern.permute.xlu1 %v3231_v60 }
 0x16c   : > { %1129 = vperm.xlu1 %2892, %v3022_v46  }
 0x16d   : > { %v989_v49 = vadd.f32 %v925_v42, %v733_v17  ;;  %v990_v50 = vadd.f32 %v926_v43, %v734_v39  ;;  %v3025_v17 = vld [vmem:[%s3453_s0 + $0x98] sm:$0xff]  ;;  %v423_v42 = vld [vmem:[%s3434_s21 + $0x1e0] sm:$0xff] }
 0x16e   : > { %v743_v13 = vmul.f32 %v676_v34, %v423_v42 }
 0x16f   : > { %v661_v59 = vpop.permute.xlu1 %660  ;;  %v1028_v61 = vpack.c.bf16 %v990_v50, %v988_v48  ;;  %v1027_v63 = vpack.c.bf16 %v989_v49, %v987_v47  ;;  %v424_v47 = vld [vmem:[%s3434_s21 + $0x1e8] sm:$0xff]  ;;  %v869_v48 = vpop.permute.xlu0 %868  ;;  %v487_v49 = vld [vmem:[%s3441_s23 + $0x1e0] sm:$0xff] }
 0x170   : > { %2894 = vset.pattern.permute.xlu1 %v3232_v62  ;;  %v737_v10 = vmul.f32 %v661_v59, %v417_v6  ;;  %v738_v11 = vmul.f32 %v661_v59, %v418_v7  ;;  %v488_v50 = vld [vmem:[%s3441_s23 + $0x1e8] sm:$0xff]  ;;  %v490_v59 = vld [vmem:[%s3441_s23 + $0x1f8] sm:$0xff] }
 0x171   : > { %1851 = vmatprep.mubr.bf16.mxu0 %v1028_v61  ;;  %1333 = vperm.xlu1 %2894, %v3022_v46   ;;  %v744_v61 = vmul.f32 %v676_v34, %v424_v47  ;;  %v936_v35 = vmul.f32 %v869_v48, %v488_v50 }
 0x172   : > { %1852 = vmatmul.mubr.bf16.gmra.mxu0 %v1027_v63  ;;  %v935_v63 = vmul.f32 %v869_v48, %v487_v49 }
 0x174   : > { %v857_v22 = vpop.permute.xlu1 %856 }
 0x175   : > { %v929_v12 = vmul.f32 %v857_v22, %v481_v1  ;;  %v930_v14 = vmul.f32 %v857_v22, %v482_v8  ;;  %2895 = vset.pattern.permute.xlu1 %v3231_v60  ;;  %v3026_v1 = vld [vmem:[%s3453_s0 + $0xa0] sm:$0xff]  ;;  %v999_v8 = vadd.f32 %v935_v63, %v743_v13 }
 0x176   : > { %1133 = vperm.xlu1 %2895, %v3023_v15  }
 0x177   : > { %v993_v16 = vadd.f32 %v929_v12, %v737_v10  ;;  %v994_v4 = vadd.f32 %v930_v14, %v738_v11  ;;  %v1197_v12 = vlaneseq }
 0x179   : > { %v666_v32 = vpop.permute.xlu1 %665  ;;  %v1030_v18 = vpack.c.bf16 %v994_v4, %v992_v9  ;;  %v1029_v0 = vpack.c.bf16 %v993_v16, %v991_v58  ;;  %v1000_v58 = vadd.f32 %v936_v35, %v744_v61  ;;  %v3027_v4 = vld [vmem:[%s3453_s0 + $0xa8] sm:$0xff] }
 0x17a   : > { %2896 = vset.pattern.permute.xlu1 %v3232_v62  ;;  %v739_v36 = vmul.f32 %v666_v32, %v419_v26  ;;  %v740_v51 = vmul.f32 %v666_v32, %v420_v27 }
 0x17b   : > { %1861 = vmatprep.mubr.bf16.mxu0 %v1030_v18  ;;  %1337 = vperm.xlu1 %2896, %v3023_v15   ;;  %v1198_v15 = vshrl.u32 %v1197_v12, 7  ;;  %v1067_v18 = vld [vmem:[%s4381_s4] sm:$0x3]  ;;  %v3030_v12 = vld [vmem:[%s3453_s0 + $0xc8] sm:$0xff] }
 0x17c   : > { %1862 = vmatmul.mubr.bf16.gmra.mxu0 %v1029_v0 }
 0x17d   : > { %v1203_v32 = vsub.s32 1, %v1198_v15  ;;  %v1199_v0 = vsub.s32 0, %v1198_v15 }
 0x17e   : > { %v861_v20 = vpop.permute.xlu1 %860 }
 0x17f   : > { %1341 = vperm.xlu1 %2896, %v3024_v25   ;;  %v931_v30 = vmul.f32 %v861_v20, %v483_v21  ;;  %v932_v52 = vmul.f32 %v861_v20, %v484_v23  ;;  %v1074_v21 = vpop.permute.xlu0 %1073  ;;  %v3028_v23 = vld [vmem:[%s3453_s0 + $0xb8] sm:$0xff]  ;;  %v4000_v24 = vrot.slane %v1067_v18, %v1203_v32  ;;  %v4002_v41 = vrot.slane %v1271_v19, %v1203_v32 }
 0x180   : > { %v4004_v26 = vrot.slane %v1067_v18, %v1199_v0  ;;  %v4006_v25 = vrot.slane %v1271_v19, %v1199_v0 }
 0x181   : > { %v995_v39 = vadd.f32 %v931_v30, %v739_v36  ;;  %v996_v40 = vadd.f32 %v932_v52, %v740_v51  ;;  %v1210_v51 = vmul.f32 %v4000_v24, %v1074_v21 }
 0x182   : > { %v865_v55 = vpop.permute.xlu1 %864  ;;  %v1209_v52 = vmul.f32 %v4004_v26, %v1074_v21 }
 0x183   : > { %v933_v37 = vmul.f32 %v865_v55, %v485_v28  ;;  %v934_v38 = vmul.f32 %v865_v55, %v486_v29  ;;  %2897 = vset.pattern.permute.xlu1 %v3231_v60 }
 0x184   : > { %1145 = vperm.xlu1 %2897, %v3025_v17  }
 0x185   : > { %v997_v57 = vadd.f32 %v933_v37, %v741_v31  ;;  %v998_v2 = vadd.f32 %v934_v38, %v742_v33  ;;  %v1078_v31 = vpop.permute.xlu0 %1077 }
 0x186   : > { %v1212_v49 = vmul.f32 %v4000_v24, %v1078_v31 }
 0x187   : > { %v681_v43 = vpop.permute.xlu1 %680  ;;  %v1032_v45 = vpack.c.bf16 %v998_v2, %v996_v40  ;;  %v1031_v46 = vpack.c.bf16 %v997_v57, %v995_v39  ;;  %v3029_v2 = vld [vmem:[%s3453_s0 + $0xc0] sm:$0xff] }
 0x188   : > { %2899 = vset.pattern.permute.xlu1 %v3232_v62  ;;  %v745_v44 = vmul.f32 %v681_v43, %v425_v54  ;;  %v746_v5 = vmul.f32 %v681_v43, %v426_v53 }
 0x189   : > { %1871 = vmatprep.mubr.bf16.mxu0 %v1032_v45  ;;  %1349 = vperm.xlu1 %2899, %v3025_v17   ;;  %v1282_v45 = vpop.permute.xlu0 %1281 }
 0x18a   : > { %1872 = vmatmul.mubr.bf16.gmra.mxu0 %v1031_v46  ;;  %v1416_v50 = vmul.f32 %v4002_v41, %v1282_v45  ;;  %v1415_v13 = vmul.f32 %v4006_v25, %v1282_v45 }
 0x18c   : > { %v873_v3 = vpop.permute.xlu1 %872 }
 0x18d   : > { %v937_v6 = vmul.f32 %v873_v3, %v489_v56  ;;  %v938_v7 = vmul.f32 %v873_v3, %v490_v59  ;;  %2900 = vset.pattern.permute.xlu1 %v3231_v60  ;;  %v1211_v56 = vmul.f32 %v4004_v26, %v1078_v31 }
 0x18e   : > { %1149 = vperm.xlu1 %2900, %v3026_v1  }
 0x18f   : > { %v1001_v9 = vadd.f32 %v937_v6, %v745_v44  ;;  %v1002_v22 = vadd.f32 %v938_v7, %v746_v5 }
 0x191   : > { %v1034_v10 = vpack.c.bf16 %v1002_v22, %v1000_v58  ;;  %v1033_v11 = vpack.c.bf16 %v1001_v9, %v999_v8  ;;  %v1070_v14 = vpop.permute.xlu1 %1069  ;;  %v1479_v9 = vadd.f32 %v1415_v13, %v1211_v56 }
 0x192   : > { %2901 = vset.pattern.permute.xlu1 %v3232_v62  ;;  %v1208_v28 = vmul.f32 %v4000_v24, %v1070_v14  ;;  %v1207_v33 = vmul.f32 %v4004_v26, %v1070_v14  ;;  %v1298_v14 = vpop.permute.xlu0 %1297 }
 0x193   : > { %1881 = vmatprep.mubr.bf16.mxu0 %v1034_v10  ;;  %1353 = vperm.xlu1 %2901, %v3026_v1   ;;  %v1480_v1 = vadd.f32 %v1416_v50, %v1212_v49 }
 0x194   : > { %1882 = vmatmul.mubr.bf16.gmra.mxu0 %v1033_v11 }
 0x196   : > { %v1274_v16 = vpop.permute.xlu1 %1273 }
 0x197   : > { %1357 = vperm.xlu1 %2901, %v3027_v4   ;;  %v1412_v29 = vmul.f32 %v4002_v41, %v1274_v16  ;;  %v1411_v34 = vmul.f32 %v4006_v25, %v1274_v16 }
 0x199   : > { %v1476_v38 = vadd.f32 %v1412_v29, %v1208_v28  ;;  %v1475_v40 = vadd.f32 %v1411_v34, %v1207_v33  ;;  %v1090_v29 = vpop.permute.xlu0 %1089 }
 0x19a   : > { %v1278_v20 = vpop.permute.xlu1 %1277  ;;  %v1217_v34 = vmul.f32 %v4004_v26, %v1090_v29 }
 0x19b   : > { %2902 = vset.pattern.permute.xlu1 %v3231_v60  ;;  %v1413_v30 = vmul.f32 %v4006_v25, %v1278_v20  ;;  %v1414_v36 = vmul.f32 %v4002_v41, %v1278_v20 }
 0x19c   : > { %1161 = vperm.xlu1 %2902, %v3028_v23  }
 0x19d   : > { %v1477_v17 = vadd.f32 %v1413_v30, %v1209_v52  ;;  %v1478_v46 = vadd.f32 %v1414_v36, %v1210_v51  ;;  %v1094_v50 = vpop.permute.xlu0 %1093 }
 0x19e   : > { %v1220_v13 = vmul.f32 %v4000_v24, %v1094_v50 }
 0x19f   : > { %v1082_v27 = vpop.permute.xlu1 %1081 }
 0x1a0   : > { %2904 = vset.pattern.permute.xlu1 %v3232_v62  ;;  %v1213_v63 = vmul.f32 %v4004_v26, %v1082_v27  ;;  %v1214_v6 = vmul.f32 %v4000_v24, %v1082_v27 }
 0x1a1   : > { %1365 = vperm.xlu1 %2904, %v3028_v23   ;;  %v3031_v23 = vld [vmem:[%s3453_s0 + $0xd8] sm:$0xff] }
 0x1a2   : > { %v1733_v55 = vpop.f32.mrf.mxu0 }
 0x1a3   : > { %v1734_v47 = vadd.f32 %v1733_v55, %v1475_v40  ;;  %v1218_v40 = vmul.f32 %v4000_v24, %v1090_v29  ;;  %v1106_v29 = vpop.permute.xlu0 %1105 }
 0x1a4   : > { %v1735_v37 = vpop.f32.mrf.mxu0  ;;  %v1286_v39 = vpop.permute.xlu1 %1285 }
 0x1a5   : > { %2905 = vset.pattern.permute.xlu1 %v3231_v60  ;;  %v1736_v42 = vadd.f32 %v1735_v37, %v1476_v38  ;;  %v1417_v3 = vmul.f32 %v4006_v25, %v1286_v39  ;;  %v1892_v44 = vmax.f32 %v1734_v47, 0.0  ;;  %v1418_v7 = vmul.f32 %v4002_v41, %v1286_v39  ;;  %v3032_v47 = vld [vmem:[%s3453_s0 + $0xe0] sm:$0xff] }
 0x1a6   : > { %v1737_v57 = vpop.f32.mrf.mxu0  ;;  %1165 = vperm.xlu1 %2905, %v3029_v2  }
 0x1a7   : > { %v1738_v43 = vadd.f32 %v1737_v57, %v1477_v17  ;;  %v1893_v61 = vmax.f32 %v1736_v42, 0.0  ;;  %v1481_v11 = vadd.f32 %v1417_v3, %v1213_v63  ;;  %v1482_v32 = vadd.f32 %v1418_v7, %v1214_v6 }
 0x1a8   : > { %v1739_v48 = vpop.f32.mrf.mxu0 }
 0x1a9   : > { %v1740_v54 = vadd.f32 %v1739_v48, %v1478_v46  ;;  %v1086_v53 = vpop.permute.xlu1 %1085  ;;  %v1894_v59 = vmax.f32 %v1738_v43, 0.0 }
 0x1aa   : > { %2906 = vset.pattern.permute.xlu1 %v3232_v62  ;;  %v1216_v55 = vmul.f32 %v4000_v24, %v1086_v53  ;;  %v1215_v37 = vmul.f32 %v4004_v26, %v1086_v53 }
 0x1ab   : > { %v1895_v35 = vmax.f32 %v1740_v54, 0.0  ;;  %1369 = vperm.xlu1 %2906, %v3029_v2   ;;  %v1956_v58 = vpack.c.bf16 %v1894_v59, %v1892_v44  ;;  %v1424_v59 = vmul.f32 %v4002_v41, %v1298_v14  ;;  %v1219_v44 = vmul.f32 %v4004_v26, %v1094_v50 }
 0x1ac   : > { %v1743_v5 = vpop.f32.mrf.mxu0 }
 0x1ad   : > { %v1957_v8 = vpack.c.bf16 %v1895_v35, %v1893_v61  ;;  %v1744_v18 = vadd.f32 %v1743_v5, %v1479_v9  ;;  %v1423_v35 = vmul.f32 %v4006_v25, %v1298_v14 }
 0x1ae   : > { %v1745_v22 = vpop.f32.mrf.mxu0  ;;  %v1290_v10 = vpop.permute.xlu1 %1289 }
 0x1af   : > { %2212 = vmatprep.mubr.bf16.mxu1 %v1957_v8  ;;  %1373 = vperm.xlu1 %2906, %v3030_v12   ;;  %v1746_v16 = vadd.f32 %v1745_v22, %v1480_v1  ;;  %v1896_v30 = vmax.f32 %v1744_v18, 0.0  ;;  %v1420_v36 = vmul.f32 %v4002_v41, %v1290_v10  ;;  %v1419_v38 = vmul.f32 %v4006_v25, %v1290_v10 }
 0x1b0   : > { %v1747_v15 = vpop.f32.mrf.mxu0  ;;  %2213 = vmatmul.mubr.bf16.vlgmr.msra.gmra.mxu1 %v1956_v58  ;;  %v1487_v14 = vadd.f32 %v1423_v35, %v1219_v44 }
 0x1b1   : > { %v1748_v4 = vadd.f32 %v1747_v15, %v1481_v11  ;;  %v1897_v27 = vmax.f32 %v1746_v16, 0.0  ;;  %v1484_v2 = vadd.f32 %v1420_v36, %v1216_v55  ;;  %v1483_v45 = vadd.f32 %v1419_v38, %v1215_v37 }
 0x1b2   : > { %v1749_v0 = vpop.f32.mrf.mxu0  ;;  %v1294_v19 = vpop.permute.xlu1 %1293  ;;  %v1488_v11 = vadd.f32 %v1424_v59, %v1220_v13  ;;  %v1225_v37 = vmul.f32 %v4004_v26, %v1106_v29 }
 0x1b3   : > { %v1750_v20 = vadd.f32 %v1749_v0, %v1482_v32  ;;  %2907 = vset.pattern.permute.xlu1 %v3231_v60  ;;  %v1898_v21 = vmax.f32 %v1748_v4, 0.0  ;;  %v1421_v51 = vmul.f32 %v4006_v25, %v1294_v19  ;;  %v1422_v39 = vmul.f32 %v4002_v41, %v1294_v19  ;;  %v3033_v32 = vld [vmem:[%s3453_s0 + $0xe8] sm:$0xff] }
 0x1b4   : > { %1177 = vperm.xlu1 %2907, %v3031_v23  }
 0x1b5   : > { %v1899_v28 = vmax.f32 %v1750_v20, 0.0  ;;  %v1958_v33 = vpack.c.bf16 %v1898_v21, %v1896_v30  ;;  %v1485_v42 = vadd.f32 %v1421_v51, %v1217_v34  ;;  %v1486_v54 = vadd.f32 %v1422_v39, %v1218_v40  ;;  %v1110_v39 = vpop.permute.xlu0 %1109 }
 0x1b6   : > { %v1227_v44 = vmul.f32 %v4004_v26, %v1110_v39 }
 0x1b7   : > { %v1959_v52 = vpack.c.bf16 %v1899_v28, %v1897_v27  ;;  %v1098_v31 = vpop.permute.xlu1 %1097 }
 0x1b8   : > { %2910 = vset.pattern.permute.xlu1 %v3232_v62  ;;  %v1221_v6 = vmul.f32 %v4004_v26, %v1098_v31  ;;  %v1222_v9 = vmul.f32 %v4000_v24, %v1098_v31 }
 0x1b9   : > { %2222 = vmatprep.mubr.bf16.mxu1 %v1959_v52  ;;  %1381 = vperm.xlu1 %2910, %v3031_v23   ;;  %v3034_v52 = vld [vmem:[%s3453_s0 + $0xf8] sm:$0xff]  ;;  %s2699_s0 = sshll.u32 %s3430_s29, 4 }
 0x1ba   : > { %v1753_v17 = vpop.f32.mrf.mxu0  ;;  %2223 = vmatmul.mubr.bf16.gmra.mxu1 %v1958_v33  ;;  %s354_s12 = scalar_lea.vmem [#allocation7], %s2699_s0 }
 0x1bb   : > { %v1754_v53 = vadd.f32 %v1753_v17, %v1483_v45  ;;  %s2580_s15 = sshll.u32 %s354_s12, 4  ;;  %s2581_s15 = int_to_ptr.vmem [resolvable:$true] %s2580_s15 }
 0x1bc   : > { %v1755_v57 = vpop.f32.mrf.mxu0  ;;  %v1302_v43 = vpop.permute.xlu1 %1301  ;;  %s3155_s19 = scalar_lea.vmem %s2581_s15, 256 }
 0x1bd   : > { %2911 = vset.pattern.permute.xlu1 %v3231_v60  ;;  %v1756_v48 = vadd.f32 %v1755_v57, %v1484_v2  ;;  %v1425_v1 = vmul.f32 %v4006_v25, %v1302_v43  ;;  %v1900_v8 = vmax.f32 %v1754_v53, 0.0  ;;  %v1426_v10 = vmul.f32 %v4002_v41, %v1302_v43  ;;  %v1314_v53 = vpop.permute.xlu0 %1313  ;;  %p3156_p1 = scmp.ne.s32.totalorder %s2581_s15, %s3155_s19 }
 0x1be   : > { %v1757_v46 = vpop.f32.mrf.mxu0  ;;  %1181 = vperm.xlu1 %2911, %v3032_v47   ;;  %v1226_v43 = vmul.f32 %v4000_v24, %v1106_v29 }
 0x1bf   : > { %v1758_v49 = vadd.f32 %v1757_v46, %v1485_v42  ;;  %v1901_v5 = vmax.f32 %v1756_v48, 0.0  ;;  %v1489_v4 = vadd.f32 %v1425_v1, %v1221_v6  ;;  %v1490_v20 = vadd.f32 %v1426_v10, %v1222_v9  ;;  %p3157_p7 = pnand %p3156_p1, %p4403_p12 }
 0x1c0   : > { %v1759_v56 = vpop.f32.mrf.mxu0  ;;  %v1431_v6 = vmul.f32 %v4006_v25, %v1314_v53 }
 0x1c1   : > { %v1760_v61 = vadd.f32 %v1759_v56, %v1486_v54  ;;  %v1102_v63 = vpop.permute.xlu1 %1101  ;;  %v1902_v3 = vmax.f32 %v1758_v49, 0.0  ;;  %p3158_p10 = pneg %p3157_p7 }
 0x1c2   : > { %2912 = vset.pattern.permute.xlu1 %v3232_v62  ;;  %v1224_v38 = vmul.f32 %v4000_v24, %v1102_v63  ;;  %v1223_v40 = vmul.f32 %v4004_v26, %v1102_v63  ;;  %v1432_v63 = vmul.f32 %v4002_v41, %v1314_v53 }
 0x1c3   : > { %v1903_v7 = vmax.f32 %v1760_v61, 0.0  ;;  %1385 = vperm.xlu1 %2912, %v3032_v47   ;;  %v1960_v12 = vpack.c.bf16 %v1902_v3, %v1900_v8  ;;  %v1228_v61 = vmul.f32 %v4000_v24, %v1110_v39 }
 0x1c4   : > { %v1763_v58 = vpop.f32.mrf.mxu0 }
 0x1c5   : > { %v1961_v22 = vpack.c.bf16 %v1903_v7, %v1901_v5  ;;  %v1764_v21 = vadd.f32 %v1763_v58, %v1487_v14  ;;  %v1496_v14 = vadd.f32 %v1432_v63, %v1228_v61 }
 0x1c6   : > { %v1765_v15 = vpop.f32.mrf.mxu0  ;;  %v1306_v16 = vpop.permute.xlu1 %1305 }
 0x1c7   : > { %2232 = vmatprep.mubr.bf16.mxu1 %v1961_v22  ;;  %1389 = vperm.xlu1 %2912, %v3033_v32   ;;  %v1766_v0 = vadd.f32 %v1765_v15, %v1488_v11  ;;  %v1904_v34 = vmax.f32 %v1764_v21, 0.0  ;;  %v1428_v17 = vmul.f32 %v4002_v41, %v1306_v16  ;;  %v1427_v57 = vmul.f32 %v4006_v25, %v1306_v16 }
 0x1c8   : > { %v1767_v18 = vpop.f32.mrf.mxu0  ;;  %2233 = vmatmul.mubr.bf16.gmra.mxu1 %v1960_v12  ;;  %v1495_v16 = vadd.f32 %v1431_v6, %v1227_v44 }
 0x1c9   : > { %v1768_v19 = vadd.f32 %v1767_v18, %v1489_v4  ;;  %v1905_v31 = vmax.f32 %v1766_v0, 0.0  ;;  %v1492_v45 = vadd.f32 %v1428_v17, %v1224_v38  ;;  %v1491_v48 = vadd.f32 %v1427_v57, %v1223_v40 }
 0x1ca   : > { %v1769_v23 = vpop.f32.mrf.mxu0  ;;  %v1310_v27 = vpop.permute.xlu1 %1309 }
 0x1cb   : > { %v1770_v28 = vadd.f32 %v1769_v23, %v1490_v20  ;;  %2913 = vset.pattern.permute.xlu1 %v3231_v60  ;;  %v1906_v30 = vmax.f32 %v1768_v19, 0.0  ;;  %v1429_v60 = vmul.f32 %v4006_v25, %v1310_v27  ;;  %v1430_v42 = vmul.f32 %v4002_v41, %v1310_v27  ;;  %v1330_v19 = vpop.permute.xlu0 %1329 }
 0x1cc   : > { %1193 = vperm.xlu1 %2913, %v3034_v52   ;;  %v1440_v61 = vmul.f32 %v4002_v41, %v1330_v19  ;;  %v1439_v44 = vmul.f32 %v4006_v25, %v1330_v19 }
 0x1cd   : > { %v1907_v33 = vmax.f32 %v1770_v28, 0.0  ;;  %v1962_v51 = vpack.c.bf16 %v1906_v30, %v1904_v34  ;;  %v1493_v46 = vadd.f32 %v1429_v60, %v1225_v37  ;;  %v1494_v56 = vadd.f32 %v1430_v42, %v1226_v43 }
 0x1cf   : > { %v1963_v55 = vpack.c.bf16 %v1907_v33, %v1905_v31  ;;  %v1114_v36 = vpop.permute.xlu1 %1113 }
 0x1d0   : > { %2915 = vset.pattern.permute.xlu1 %v3232_v62  ;;  %v1229_v1 = vmul.f32 %v4004_v26, %v1114_v36  ;;  %v1230_v10 = vmul.f32 %v4000_v24, %v1114_v36 }
 0x1d1   : > { %2242 = vmatprep.mubr.bf16.mxu1 %v1963_v55  ;;  %1397 = vperm.xlu1 %2915, %v3034_v52   ;;  %v1122_v55 = vpop.permute.xlu0 %1121 }
 0x1d2   : > { %v1773_v2 = vpop.f32.mrf.mxu0  ;;  %2243 = vmatmul.mubr.bf16.gmra.mxu1 %v1962_v51  ;;  %v1233_v39 = vmul.f32 %v4004_v26, %v1122_v55  ;;  %v1234_v43 = vmul.f32 %v4000_v24, %v1122_v55 }
 0x1d3   : > { %v1774_v59 = vadd.f32 %v1773_v2, %v1491_v48 }
 0x1d4   : > { %v1775_v62 = vpop.f32.mrf.mxu0  ;;  %v1318_v47 = vpop.permute.xlu1 %1317 }
 0x1d5   : > { %v1776_v50 = vadd.f32 %v1775_v62, %v1492_v45  ;;  %v1433_v58 = vmul.f32 %v4006_v25, %v1318_v47  ;;  %v1908_v9 = vmax.f32 %v1774_v59, 0.0  ;;  %v1434_v12 = vmul.f32 %v4002_v41, %v1318_v47  ;;  %v1126_v53 = vpop.permute.xlu0 %1125 }
 0x1d6   : > { %v1777_v49 = vpop.f32.mrf.mxu0  ;;  %v1236_v63 = vmul.f32 %v4000_v24, %v1126_v53  ;;  %v1235_v6 = vmul.f32 %v4004_v26, %v1126_v53 }
 0x1d7   : > { %v1778_v54 = vadd.f32 %v1777_v49, %v1493_v46  ;;  %v1909_v7 = vmax.f32 %v1776_v50, 0.0  ;;  %v1497_v18 = vadd.f32 %v1433_v58, %v1229_v1  ;;  %v1498_v23 = vadd.f32 %v1434_v12, %v1230_v10 }
 0x1d8   : > { %v1779_v13 = vpop.f32.mrf.mxu0 }
 0x1d9   : > { %v1780_v35 = vadd.f32 %v1779_v13, %v1494_v56  ;;  %v1118_v3 = vpop.permute.xlu1 %1117  ;;  %v1910_v5 = vmax.f32 %v1778_v54, 0.0 }
 0x1da   : > { %v1232_v38 = vmul.f32 %v4000_v24, %v1118_v3  ;;  %v1231_v40 = vmul.f32 %v4004_v26, %v1118_v3 }
 0x1db   : > { %v1911_v8 = vmax.f32 %v1780_v35, 0.0  ;;  %v1964_v15 = vpack.c.bf16 %v1910_v5, %v1908_v9 }
 0x1dc   : > { %v1783_v22 = vpop.f32.mrf.mxu0 }
 0x1dd   : > { %v1965_v11 = vpack.c.bf16 %v1911_v8, %v1909_v7  ;;  %v1784_v27 = vadd.f32 %v1783_v22, %v1495_v16  ;;  %v1503_v16 = vadd.f32 %v1439_v44, %v1235_v6 }
 0x1de   : > { %v1785_v4 = vpop.f32.mrf.mxu0  ;;  %v1322_v32 = vpop.permute.xlu1 %1321 }
 0x1df   : > { %2252 = vmatprep.mubr.bf16.mxu1 %v1965_v11  ;;  %v1786_v20 = vadd.f32 %v1785_v4, %v1496_v14  ;;  %v1912_v34 = vmax.f32 %v1784_v27, 0.0  ;;  %v1436_v17 = vmul.f32 %v4002_v41, %v1322_v32  ;;  %v1435_v57 = vmul.f32 %v4006_v25, %v1322_v32 }
 0x1e0   : > { %v1787_v0 = vpop.f32.mrf.mxu0  ;;  %2253 = vmatmul.mubr.bf16.gmra.mxu1 %v1964_v15  ;;  %v1504_v14 = vadd.f32 %v1440_v61, %v1236_v63 }
 0x1e1   : > { %v1788_v21 = vadd.f32 %v1787_v0, %v1497_v18  ;;  %v1913_v31 = vmax.f32 %v1786_v20, 0.0  ;;  %v1500_v45 = vadd.f32 %v1436_v17, %v1232_v38  ;;  %v1499_v48 = vadd.f32 %v1435_v57, %v1231_v40 }
 0x1e2   : > { %v1789_v28 = vpop.f32.mrf.mxu0  ;;  %v1326_v29 = vpop.permute.xlu1 %1325 }
 0x1e3   : > { %v1790_v30 = vadd.f32 %v1789_v28, %v1498_v23  ;;  %v1914_v52 = vmax.f32 %v1788_v21, 0.0  ;;  %v1437_v60 = vmul.f32 %v4006_v25, %v1326_v29  ;;  %v1438_v42 = vmul.f32 %v4002_v41, %v1326_v29 }
 0x1e5   : > { %v1915_v33 = vmax.f32 %v1790_v30, 0.0  ;;  %v1966_v37 = vpack.c.bf16 %v1914_v52, %v1912_v34  ;;  %v1501_v46 = vadd.f32 %v1437_v60, %v1233_v39  ;;  %v1502_v56 = vadd.f32 %v1438_v42, %v1234_v43  ;;  %v1138_v30 = vpop.permute.xlu0 %1137 }
 0x1e6   : > { %v1241_v60 = vmul.f32 %v4004_v26, %v1138_v30  ;;  %v1242_v43 = vmul.f32 %v4000_v24, %v1138_v30 }
 0x1e7   : > { %v1967_v36 = vpack.c.bf16 %v1915_v33, %v1913_v31  ;;  %v1130_v51 = vpop.permute.xlu1 %1129 }
 0x1e8   : > { %v1237_v1 = vmul.f32 %v4004_v26, %v1130_v51  ;;  %v1238_v10 = vmul.f32 %v4000_v24, %v1130_v51 }
 0x1e9   : > { %2262 = vmatprep.mubr.bf16.mxu1 %v1967_v36  ;;  %v1142_v39 = vpop.permute.xlu0 %1141 }
 0x1ea   : > { %v1793_v2 = vpop.f32.mrf.mxu0  ;;  %2263 = vmatmul.mubr.bf16.gmra.mxu1 %v1966_v37  ;;  %v1244_v61 = vmul.f32 %v4000_v24, %v1142_v39  ;;  %v1243_v44 = vmul.f32 %v4004_v26, %v1142_v39 }
 0x1eb   : > { %v1794_v59 = vadd.f32 %v1793_v2, %v1499_v48 }
 0x1ec   : > { %v1795_v62 = vpop.f32.mrf.mxu0  ;;  %v1334_v47 = vpop.permute.xlu1 %1333 }
 0x1ed   : > { %v1796_v50 = vadd.f32 %v1795_v62, %v1500_v45  ;;  %v1441_v58 = vmul.f32 %v4006_v25, %v1334_v47  ;;  %v1916_v9 = vmax.f32 %v1794_v59, 0.0  ;;  %v1442_v12 = vmul.f32 %v4002_v41, %v1334_v47  ;;  %v1346_v53 = vpop.permute.xlu0 %1345 }
 0x1ee   : > { %v1797_v49 = vpop.f32.mrf.mxu0  ;;  %v1448_v63 = vmul.f32 %v4002_v41, %v1346_v53  ;;  %v1447_v6 = vmul.f32 %v4006_v25, %v1346_v53 }
 0x1ef   : > { %v1798_v54 = vadd.f32 %v1797_v49, %v1501_v46  ;;  %v1917_v7 = vmax.f32 %v1796_v50, 0.0  ;;  %v1505_v18 = vadd.f32 %v1441_v58, %v1237_v1  ;;  %v1506_v21 = vadd.f32 %v1442_v12, %v1238_v10 }
 0x1f0   : > { %v1799_v13 = vpop.f32.mrf.mxu0 }
 0x1f1   : > { %v1800_v35 = vadd.f32 %v1799_v13, %v1502_v56  ;;  %v1134_v3 = vpop.permute.xlu1 %1133  ;;  %v1918_v5 = vmax.f32 %v1798_v54, 0.0 }
 0x1f2   : > { %v1240_v37 = vmul.f32 %v4000_v24, %v1134_v3  ;;  %v1239_v40 = vmul.f32 %v4004_v26, %v1134_v3 }
 0x1f3   : > { %v1919_v8 = vmax.f32 %v1800_v35, 0.0  ;;  %v1968_v15 = vpack.c.bf16 %v1918_v5, %v1916_v9 }
 0x1f4   : > { %v1803_v22 = vpop.f32.mrf.mxu0 }
 0x1f5   : > { %v1969_v11 = vpack.c.bf16 %v1919_v8, %v1917_v7  ;;  %v1804_v23 = vadd.f32 %v1803_v22, %v1503_v16  ;;  %v1511_v16 = vadd.f32 %v1447_v6, %v1243_v44 }
 0x1f6   : > { %v1805_v4 = vpop.f32.mrf.mxu0  ;;  %v1338_v32 = vpop.permute.xlu1 %1337 }
 0x1f7   : > { %2272 = vmatprep.mubr.bf16.mxu1 %v1969_v11  ;;  %v1806_v19 = vadd.f32 %v1805_v4, %v1504_v14  ;;  %v1920_v34 = vmax.f32 %v1804_v23, 0.0  ;;  %v1444_v38 = vmul.f32 %v4002_v41, %v1338_v32  ;;  %v1443_v57 = vmul.f32 %v4006_v25, %v1338_v32 }
 0x1f8   : > { %v1807_v0 = vpop.f32.mrf.mxu0  ;;  %2273 = vmatmul.mubr.bf16.gmra.mxu1 %v1968_v15  ;;  %v1512_v14 = vadd.f32 %v1448_v63, %v1244_v61 }
 0x1f9   : > { %v1808_v20 = vadd.f32 %v1807_v0, %v1505_v18  ;;  %v1921_v31 = vmax.f32 %v1806_v19, 0.0  ;;  %v1508_v45 = vadd.f32 %v1444_v38, %v1240_v37  ;;  %v1507_v48 = vadd.f32 %v1443_v57, %v1239_v40  ;;  %v1362_v19 = vpop.permute.xlu0 %1361 }
 0x1fa   : > { %v1809_v27 = vpop.f32.mrf.mxu0  ;;  %v1342_v28 = vpop.permute.xlu1 %1341  ;;  %v1456_v61 = vmul.f32 %v4002_v41, %v1362_v19  ;;  %v1455_v44 = vmul.f32 %v4006_v25, %v1362_v19 }
 0x1fb   : > { %v1810_v29 = vadd.f32 %v1809_v27, %v1506_v21  ;;  %v1922_v52 = vmax.f32 %v1808_v20, 0.0  ;;  %v1445_v17 = vmul.f32 %v4006_v25, %v1342_v28  ;;  %v1446_v42 = vmul.f32 %v4002_v41, %v1342_v28 }
 0x1fd   : > { %v1923_v33 = vmax.f32 %v1810_v29, 0.0  ;;  %v1970_v51 = vpack.c.bf16 %v1922_v52, %v1920_v34  ;;  %v1509_v46 = vadd.f32 %v1445_v17, %v1241_v60  ;;  %v1510_v56 = vadd.f32 %v1446_v42, %v1242_v43 }
 0x1ff   : > { %v1971_v55 = vpack.c.bf16 %v1923_v33, %v1921_v31  ;;  %v1146_v36 = vpop.permute.xlu1 %1145 }
 0x200   : > { %v1245_v1 = vmul.f32 %v4004_v26, %v1146_v36  ;;  %v1246_v10 = vmul.f32 %v4000_v24, %v1146_v36 }
 0x201   : > { %2282 = vmatprep.mubr.bf16.mxu1 %v1971_v55  ;;  %v1154_v55 = vpop.permute.xlu0 %1153 }
 0x202   : > { %v1813_v2 = vpop.f32.mrf.mxu0  ;;  %2283 = vmatmul.mubr.bf16.gmra.mxu1 %v1970_v51  ;;  %v1249_v39 = vmul.f32 %v4004_v26, %v1154_v55  ;;  %v1250_v43 = vmul.f32 %v4000_v24, %v1154_v55 }
 0x203   : > { %v1814_v59 = vadd.f32 %v1813_v2, %v1507_v48 }
 0x204   : > { %v1815_v62 = vpop.f32.mrf.mxu0  ;;  %v1350_v47 = vpop.permute.xlu1 %1349 }
 0x205   : > { %v1816_v50 = vadd.f32 %v1815_v62, %v1508_v45  ;;  %v1449_v58 = vmul.f32 %v4006_v25, %v1350_v47  ;;  %v1924_v9 = vmax.f32 %v1814_v59, 0.0  ;;  %v1450_v12 = vmul.f32 %v4002_v41, %v1350_v47  ;;  %v1158_v53 = vpop.permute.xlu0 %1157 }
 0x206   : > { %v1817_v49 = vpop.f32.mrf.mxu0  ;;  %v1252_v63 = vmul.f32 %v4000_v24, %v1158_v53  ;;  %v1251_v6 = vmul.f32 %v4004_v26, %v1158_v53 }
 0x207   : > { %v1818_v54 = vadd.f32 %v1817_v49, %v1509_v46  ;;  %v1925_v7 = vmax.f32 %v1816_v50, 0.0  ;;  %v1513_v18 = vadd.f32 %v1449_v58, %v1245_v1  ;;  %v1514_v23 = vadd.f32 %v1450_v12, %v1246_v10 }
 0x208   : > { %v1819_v13 = vpop.f32.mrf.mxu0 }
 0x209   : > { %v1820_v35 = vadd.f32 %v1819_v13, %v1510_v56  ;;  %v1150_v3 = vpop.permute.xlu1 %1149  ;;  %v1926_v5 = vmax.f32 %v1818_v54, 0.0 }
 0x20a   : > { %v1248_v38 = vmul.f32 %v4000_v24, %v1150_v3  ;;  %v1247_v40 = vmul.f32 %v4004_v26, %v1150_v3 }
 0x20b   : > { %v1927_v8 = vmax.f32 %v1820_v35, 0.0  ;;  %v1972_v15 = vpack.c.bf16 %v1926_v5, %v1924_v9 }
 0x20c   : > { %v1823_v22 = vpop.f32.mrf.mxu0 }
 0x20d   : > { %v1973_v11 = vpack.c.bf16 %v1927_v8, %v1925_v7  ;;  %v1824_v27 = vadd.f32 %v1823_v22, %v1511_v16  ;;  %v1519_v16 = vadd.f32 %v1455_v44, %v1251_v6 }
 0x20e   : > { %v1825_v4 = vpop.f32.mrf.mxu0  ;;  %v1354_v32 = vpop.permute.xlu1 %1353 }
 0x20f   : > { %2292 = vmatprep.mubr.bf16.mxu1 %v1973_v11  ;;  %v1826_v20 = vadd.f32 %v1825_v4, %v1512_v14  ;;  %v1928_v34 = vmax.f32 %v1824_v27, 0.0  ;;  %v1452_v17 = vmul.f32 %v4002_v41, %v1354_v32  ;;  %v1451_v57 = vmul.f32 %v4006_v25, %v1354_v32 }
 0x210   : > { %v1827_v0 = vpop.f32.mrf.mxu0  ;;  %2293 = vmatmul.mubr.bf16.gmra.mxu1 %v1972_v15  ;;  %v1520_v14 = vadd.f32 %v1456_v61, %v1252_v63 }
 0x211   : > { %v1828_v21 = vadd.f32 %v1827_v0, %v1513_v18  ;;  %v1929_v31 = vmax.f32 %v1826_v20, 0.0  ;;  %v1516_v46 = vadd.f32 %v1452_v17, %v1248_v38  ;;  %v1515_v48 = vadd.f32 %v1451_v57, %v1247_v40 }
 0x212   : > { %v1829_v28 = vpop.f32.mrf.mxu0  ;;  %v1358_v29 = vpop.permute.xlu1 %1357 }
 0x213   : > { %v1830_v30 = vadd.f32 %v1829_v28, %v1514_v23  ;;  %v1930_v52 = vmax.f32 %v1828_v21, 0.0  ;;  %v1453_v60 = vmul.f32 %v4006_v25, %v1358_v29  ;;  %v1454_v42 = vmul.f32 %v4002_v41, %v1358_v29 }
 0x215   : > { %v1931_v33 = vmax.f32 %v1830_v30, 0.0  ;;  %v1974_v37 = vpack.c.bf16 %v1930_v52, %v1928_v34  ;;  %v1517_v47 = vadd.f32 %v1453_v60, %v1249_v39  ;;  %v1518_v56 = vadd.f32 %v1454_v42, %v1250_v43 }
 0x217   : > { %v1975_v36 = vpack.c.bf16 %v1931_v33, %v1929_v31  ;;  %v1162_v51 = vpop.permute.xlu1 %1161  ;;  %v1170_v33 = vpop.permute.xlu0 %1169 }
 0x218   : > { %v1253_v1 = vmul.f32 %v4004_v26, %v1162_v51  ;;  %v1254_v10 = vmul.f32 %v4000_v24, %v1162_v51  ;;  %v1257_v60 = vmul.f32 %v4004_v26, %v1170_v33  ;;  %v1258_v43 = vmul.f32 %v4000_v24, %v1170_v33 }
 0x219   : > { %2302 = vmatprep.mubr.bf16.mxu1 %v1975_v36 }
 0x21a   : > { %v1833_v2 = vpop.f32.mrf.mxu0  ;;  %2303 = vmatmul.mubr.bf16.gmra.mxu1 %v1974_v37 }
 0x21b   : > { %v1834_v59 = vadd.f32 %v1833_v2, %v1515_v48  ;;  %v1378_v39 = vpop.permute.xlu0 %1377 }
 0x21c   : > { %v1835_v62 = vpop.f32.mrf.mxu0  ;;  %v1366_v45 = vpop.permute.xlu1 %1365  ;;  %v1464_v61 = vmul.f32 %v4002_v41, %v1378_v39 }
 0x21d   : > { %v1836_v50 = vadd.f32 %v1835_v62, %v1516_v46  ;;  %v1457_v58 = vmul.f32 %v4006_v25, %v1366_v45  ;;  %v1932_v9 = vmax.f32 %v1834_v59, 0.0  ;;  %v1458_v12 = vmul.f32 %v4002_v41, %v1366_v45 }
 0x21e   : > { %v1837_v49 = vpop.f32.mrf.mxu0 }
 0x21f   : > { %v1838_v54 = vadd.f32 %v1837_v49, %v1517_v47  ;;  %v1933_v7 = vmax.f32 %v1836_v50, 0.0  ;;  %v1521_v18 = vadd.f32 %v1457_v58, %v1253_v1  ;;  %v1522_v21 = vadd.f32 %v1458_v12, %v1254_v10  ;;  %v1174_v53 = vpop.permute.xlu0 %1173 }
 0x220   : > { %v1839_v13 = vpop.f32.mrf.mxu0  ;;  %v1260_v63 = vmul.f32 %v4000_v24, %v1174_v53 }
 0x221   : > { %v1840_v35 = vadd.f32 %v1839_v13, %v1518_v56  ;;  %v1166_v3 = vpop.permute.xlu1 %1165  ;;  %v1934_v5 = vmax.f32 %v1838_v54, 0.0 }
 0x222   : > { %v1256_v37 = vmul.f32 %v4000_v24, %v1166_v3  ;;  %v1255_v40 = vmul.f32 %v4004_v26, %v1166_v3  ;;  %v1463_v3 = vmul.f32 %v4006_v25, %v1378_v39 }
 0x223   : > { %v1935_v8 = vmax.f32 %v1840_v35, 0.0  ;;  %v1976_v15 = vpack.c.bf16 %v1934_v5, %v1932_v9  ;;  %v1259_v5 = vmul.f32 %v4004_v26, %v1174_v53 }
 0x224   : > { %v1843_v22 = vpop.f32.mrf.mxu0 }
 0x225   : > { %v1977_v11 = vpack.c.bf16 %v1935_v8, %v1933_v7  ;;  %v1844_v23 = vadd.f32 %v1843_v22, %v1519_v16  ;;  %v1527_v16 = vadd.f32 %v1463_v3, %v1259_v5 }
 0x226   : > { %v1845_v4 = vpop.f32.mrf.mxu0  ;;  %v1370_v32 = vpop.permute.xlu1 %1369 }
 0x227   : > { %2312 = vmatprep.mubr.bf16.mxu1 %v1977_v11  ;;  %v1846_v19 = vadd.f32 %v1845_v4, %v1520_v14  ;;  %v1936_v34 = vmax.f32 %v1844_v23, 0.0  ;;  %v1460_v38 = vmul.f32 %v4002_v41, %v1370_v32  ;;  %v1459_v57 = vmul.f32 %v4006_v25, %v1370_v32 }
 0x228   : > { %v1847_v0 = vpop.f32.mrf.mxu0  ;;  %2313 = vmatmul.mubr.bf16.gmra.mxu1 %v1976_v15  ;;  %v1528_v14 = vadd.f32 %v1464_v61, %v1260_v63 }
 0x229   : > { %v1848_v20 = vadd.f32 %v1847_v0, %v1521_v18  ;;  %v1937_v52 = vmax.f32 %v1846_v19, 0.0  ;;  %v1524_v46 = vadd.f32 %v1460_v38, %v1256_v37  ;;  %v1523_v48 = vadd.f32 %v1459_v57, %v1255_v40 }
 0x22a   : > { %v1849_v27 = vpop.f32.mrf.mxu0  ;;  %v1374_v29 = vpop.permute.xlu1 %1373 }
 0x22b   : > { %v1850_v28 = vadd.f32 %v1849_v27, %v1522_v21  ;;  %v1938_v30 = vmax.f32 %v1848_v20, 0.0  ;;  %v1461_v17 = vmul.f32 %v4006_v25, %v1374_v29  ;;  %v1462_v42 = vmul.f32 %v4002_v41, %v1374_v29 }
 0x22d   : > { %v1939_v31 = vmax.f32 %v1850_v28, 0.0  ;;  %v1978_v51 = vpack.c.bf16 %v1938_v30, %v1936_v34  ;;  %v1525_v47 = vadd.f32 %v1461_v17, %v1257_v60  ;;  %v1526_v56 = vadd.f32 %v1462_v42, %v1258_v43  ;;  %v1186_v28 = vpop.permute.xlu0 %1185 }
 0x22e   : > { %v1265_v37 = vmul.f32 %v4004_v26, %v1186_v28  ;;  %v1266_v42 = vmul.f32 %v4000_v24, %v1186_v28 }
 0x22f   : > { %v1979_v55 = vpack.c.bf16 %v1939_v31, %v1937_v52  ;;  %v1178_v36 = vpop.permute.xlu1 %1177 }
 0x230   : > { %v1261_v1 = vmul.f32 %v4004_v26, %v1178_v36  ;;  %v1262_v10 = vmul.f32 %v4000_v24, %v1178_v36 }
 0x231   : > { %2322 = vmatprep.mubr.bf16.mxu1 %v1979_v55  ;;  %v1190_v17 = vpop.permute.xlu0 %1189 }
 0x232   : > { %v1853_v2 = vpop.f32.mrf.mxu0  ;;  %2323 = vmatmul.mubr.bf16.gmra.mxu1 %v1978_v51  ;;  %v1268_v63 = vmul.f32 %v4000_v24, %v1190_v17 }
 0x233   : > { %v1854_v59 = vadd.f32 %v1853_v2, %v1523_v48 }
 0x234   : > { %v1855_v62 = vpop.f32.mrf.mxu0  ;;  %v1382_v45 = vpop.permute.xlu1 %1381 }
 0x235   : > { %v1856_v50 = vadd.f32 %v1855_v62, %v1524_v46  ;;  %v1465_v58 = vmul.f32 %v4006_v25, %v1382_v45  ;;  %v1940_v9 = vmax.f32 %v1854_v59, 0.0  ;;  %v1466_v12 = vmul.f32 %v4002_v41, %v1382_v45 }
 0x236   : > { %v1857_v49 = vpop.f32.mrf.mxu0 }
 0x237   : > { %v1858_v54 = vadd.f32 %v1857_v49, %v1525_v47  ;;  %v1941_v7 = vmax.f32 %v1856_v50, 0.0  ;;  %v1529_v32 = vadd.f32 %v1465_v58, %v1261_v1  ;;  %v1530_v21 = vadd.f32 %v1466_v12, %v1262_v10  ;;  %v1394_v49 = vpop.permute.xlu0 %1393 }
 0x238   : > { %v1859_v13 = vpop.f32.mrf.mxu0  ;;  %v1267_v1 = vmul.f32 %v4004_v26, %v1190_v17 }
 0x239   : > { %v1860_v35 = vadd.f32 %v1859_v13, %v1526_v56  ;;  %v1942_v44 = vmax.f32 %v1858_v54, 0.0  ;;  %v1182_v6 = vpop.permute.xlu1 %1181 }
 0x23a   : > { %v1264_v51 = vmul.f32 %v4000_v24, %v1182_v6  ;;  %v1263_v39 = vmul.f32 %v4004_v26, %v1182_v6 }
 0x23b   : > { %v1943_v8 = vmax.f32 %v1860_v35, 0.0  ;;  %v1980_v15 = vpack.c.bf16 %v1942_v44, %v1940_v9  ;;  %v1472_v35 = vmul.f32 %v4002_v41, %v1394_v49 }
 0x23c   : > { %v1863_v22 = vpop.f32.mrf.mxu0 }
 0x23d   : > { %v1981_v11 = vpack.c.bf16 %v1943_v8, %v1941_v7  ;;  %v1864_v23 = vadd.f32 %v1863_v22, %v1527_v16  ;;  %v1471_v8 = vmul.f32 %v4006_v25, %v1394_v49 }
 0x23e   : > { %v1865_v4 = vpop.f32.mrf.mxu0  ;;  %v1386_v0 = vpop.permute.xlu1 %1385 }
 0x23f   : > { %2332 = vmatprep.mubr.bf16.mxu1 %v1981_v11  ;;  %v1866_v19 = vadd.f32 %v1865_v4, %v1528_v14  ;;  %v1944_v33 = vmax.f32 %v1864_v23, 0.0  ;;  %v1468_v38 = vmul.f32 %v4002_v41, %v1386_v0  ;;  %v1467_v40 = vmul.f32 %v4006_v25, %v1386_v0 }
 0x240   : > { %v1867_v18 = vpop.f32.mrf.mxu0  ;;  %2333 = vmatmul.mubr.bf16.gmra.mxu1 %v1980_v15  ;;  %v1536_v15 = vadd.f32 %v1472_v35, %v1268_v63  ;;  %v1535_v4 = vadd.f32 %v1471_v8, %v1267_v1  ;;  %v3035_v8 = vld [vmem:[%s3441_s23 + $0x10] sm:$0xff] }
 0x241   : > { %v1868_v20 = vadd.f32 %v1867_v18, %v1529_v32  ;;  %v1945_v52 = vmax.f32 %v1866_v19, 0.0  ;;  %v1532_v45 = vadd.f32 %v1468_v38, %v1264_v51  ;;  %v1531_v47 = vadd.f32 %v1467_v40, %v1263_v39 }
 0x242   : > { %v1869_v27 = vpop.f32.mrf.mxu0  ;;  %v1390_v34 = vpop.permute.xlu1 %1389 }
 0x243   : > { %v1870_v29 = vadd.f32 %v1869_v27, %v1530_v21  ;;  %v1946_v30 = vmax.f32 %v1868_v20, 0.0  ;;  %v1469_v60 = vmul.f32 %v4006_v25, %v1390_v34  ;;  %v1470_v43 = vmul.f32 %v4002_v41, %v1390_v34 }
 0x245   : > { %v1947_v31 = vmax.f32 %v1870_v29, 0.0  ;;  %v1982_v36 = vpack.c.bf16 %v1946_v30, %v1944_v33  ;;  %v1533_v46 = vadd.f32 %v1469_v60, %v1265_v37  ;;  %v1534_v53 = vadd.f32 %v1470_v43, %v1266_v42 }
 0x247   : > { %v1983_v55 = vpack.c.bf16 %v1947_v31, %v1945_v52  ;;  %v1194_v2 = vpop.permute.xlu1 %1193 }
 0x248   : > { %v1269_v5 = vmul.f32 %v4004_v26, %v1194_v2  ;;  %v1270_v22 = vmul.f32 %v4000_v24, %v1194_v2 }
 0x249   : > { %2342 = vmatprep.mubr.bf16.mxu1 %v1983_v55 }
 0x24a   : > { %v1873_v57 = vpop.f32.mrf.mxu0  ;;  %2343 = vmatmul.mubr.bf16.gmra.mxu1 %v1982_v36 }
 0x24b   : > { %v1874_v56 = vadd.f32 %v1873_v57, %v1531_v47 }
 0x24c   : > { %v1875_v62 = vpop.f32.mrf.mxu0  ;;  %v1398_v13 = vpop.permute.xlu1 %1397 }
 0x24d   : > { %v1876_v50 = vadd.f32 %v1875_v62, %v1532_v45  ;;  %v1473_v7 = vmul.f32 %v4006_v25, %v1398_v13  ;;  %v1948_v58 = vmax.f32 %v1874_v56, 0.0  ;;  %v1474_v11 = vmul.f32 %v4002_v41, %v1398_v13 }
 0x24e   : > { %v1877_v48 = vpop.f32.mrf.mxu0 }
 0x24f   : > { %v1878_v54 = vadd.f32 %v1877_v48, %v1533_v46  ;;  %v1949_v44 = vmax.f32 %v1876_v50, 0.0  ;;  %v1537_v16 = vadd.f32 %v1473_v7, %v1269_v5  ;;  %v1538_v26 = vadd.f32 %v1474_v11, %v1270_v22  ;;  %v3037_v11 = vld [vmem:[%s3441_s23] sm:$0xff] }
 0x250   : > { %v1879_v59 = vpop.f32.mrf.mxu0 }
 0x251   : > { %v1880_v61 = vadd.f32 %v1879_v59, %v1534_v53  ;;  %v1950_v3 = vmax.f32 %v1878_v54, 0.0 }
 0x253   : > { %v1951_v6 = vmax.f32 %v1880_v61, 0.0  ;;  %v1984_v12 = vpack.c.bf16 %v1950_v3, %v1948_v58 }
 0x254   : > { %v1883_v9 = vpop.f32.mrf.mxu0 }
 0x255   : > { %v1985_v10 = vpack.c.bf16 %v1951_v6, %v1949_v44  ;;  %v1884_v19 = vadd.f32 %v1883_v9, %v1535_v4  ;;  %v3036_v9 = vld [vmem:[%s3441_s23 + $0x18] sm:$0xff] }
 0x256   : > { %v1885_v14 = vpop.f32.mrf.mxu0 }
 0x257   : > { %2352 = vmatprep.mubr.bf16.mxu1 %v1985_v10  ;;  %v1886_v18 = vadd.f32 %v1885_v14, %v1536_v15  ;;  %v1952_v27 = vmax.f32 %v1884_v19, 0.0  ;;  %v3038_v14 = vld [vmem:[%s3441_s23 + $0x20] sm:$0xff]  ;;  %v3041_v19 = vld [vmem:[%s3441_s23 + $0x30] sm:$0xff] }
 0x258   : > { %v1887_v32 = vpop.f32.mrf.mxu0  ;;  %2353 = vmatmul.mubr.bf16.gmra.mxu1 %v1984_v12 }
 0x259   : > { %v1888_v0 = vadd.f32 %v1887_v32, %v1537_v16  ;;  %v1953_v23 = vmax.f32 %v1886_v18, 0.0  ;;  %v3039_v16 = vld [vmem:[%s3441_s23 + $0x8] sm:$0xff] }
 0x25a   : > { %v1889_v25 = vpop.f32.mrf.mxu0  ;;  %v3040_v32 = vld [vmem:[%s3441_s23 + $0x28] sm:$0xff] }
 0x25b   : > { %v1890_v20 = vadd.f32 %v1889_v25, %v1538_v26  ;;  %v1954_v21 = vmax.f32 %v1888_v0, 0.0 }
 0x25d   : > { %v1955_v24 = vmax.f32 %v1890_v20, 0.0  ;;  %v1986_v41 = vpack.c.bf16 %v1954_v21, %v1952_v27  ;;  %v3042_v21 = vld [vmem:[%s3441_s23 + $0x38] sm:$0xff] }
 0x25f   : > { %v1987_v28 = vpack.c.bf16 %v1955_v24, %v1953_v23 }
 0x261   : > { %2362 = vmatprep.mubr.bf16.mxu1 %v1987_v28 }
 0x262   : > { %2363 = vmatmul.mubr.bf16.gmra.mxu1 %v1986_v41  ;;  %v3043_v41 = vld [vmem:[%s3441_s23 + $0x40] sm:$0xff] }
 0x270   : > { %v2214_v29 = vpop.f32.mrf.mxu1 }
 0x271   : > { %v2373_v12 = vsub.f32 %v2214_v29, %v3037_v11 }
 0x272   : > { %v2216_v30 = vpop.f32.mrf.mxu1 }
 0x273   : > { %v2374_v4 = vsub.f32 %v2216_v30, %v3039_v16  ;;  %v2437_v27 = vmul.f32 %v2373_v12, %v2373_v12 }
 0x274   : > { %v2218_v52 = vpop.f32.mrf.mxu1 }
 0x275   : > { %v2375_v58 = vsub.f32 %v2218_v52, %v3035_v8  ;;  %v2438_v30 = vmul.f32 %v2374_v4, %v2374_v4 }
 0x276   : > { %v2220_v31 = vpop.f32.mrf.mxu1 }
 0x277   : > { %v2376_v22 = vsub.f32 %v2220_v31, %v3036_v9  ;;  %v2439_v26 = vmul.f32 %v2375_v58, %v2375_v58  ;;  %v3044_v31 = vld [vmem:[%s3441_s23 + $0x48] sm:$0xff]  ;;  %v3045_v58 = vld [vmem:[%s3441_s23 + $0x50] sm:$0xff] }
 0x279   : > { %v2440_v20 = vmul.f32 %v2376_v22, %v2376_v22  ;;  %v3046_v22 = vld [vmem:[%s3441_s23 + $0x58] sm:$0xff] }
 0x27a   : > { %v2224_v33 = vpop.f32.mrf.mxu1 }
 0x27b   : > { %v2377_v15 = vsub.f32 %v2224_v33, %v3038_v14  ;;  %v2502_v9 = vadd.f32 %v2440_v20, %v2438_v30 }
 0x27c   : > { %v2226_v34 = vpop.f32.mrf.mxu1 }
 0x27d   : > { %v2378_v18 = vsub.f32 %v2226_v34, %v3040_v32  ;;  %v2441_v28 = vmul.f32 %v2377_v15, %v2377_v15  ;;  %v2501_v34 = vadd.f32 %v2439_v26, %v2437_v27  ;;  %v3047_v15 = vld [vmem:[%s3441_s23 + $0x60] sm:$0xff]  ;;  %v3048_v32 = vld [vmem:[%s3441_s23 + $0x68] sm:$0xff] }
 0x27e   : > { %v2228_v55 = vpop.f32.mrf.mxu1 }
 0x27f   : > { %v2379_v25 = vsub.f32 %v2228_v55, %v3041_v19  ;;  %v2442_v52 = vmul.f32 %v2378_v18, %v2378_v18 }
 0x280   : > { %v2230_v36 = vpop.f32.mrf.mxu1 }
 0x281   : > { %v2380_v23 = vsub.f32 %v2230_v36, %v3042_v21  ;;  %v2443_v8 = vmul.f32 %v2379_v25, %v2379_v25 }
 0x283   : > { %v2444_v36 = vmul.f32 %v2380_v23, %v2380_v23  ;;  %v3050_v23 = vld [vmem:[%s3441_s23 + $0x78] sm:$0xff] }
 0x288   : > { %v2234_v51 = vpop.f32.mrf.mxu1 }
 0x289   : > { %v2381_v29 = vsub.f32 %v2234_v51, %v3043_v41  ;;  %v2503_v51 = vadd.f32 %v2501_v34, %v2441_v28  ;;  %v3051_v41 = vld [vmem:[%s3441_s23 + $0x80] sm:$0xff] }
 0x28a   : > { %v2236_v37 = vpop.f32.mrf.mxu1 }
 0x28b   : > { %v2382_v33 = vsub.f32 %v2236_v37, %v3044_v31  ;;  %v2445_v14 = vmul.f32 %v2381_v29, %v2381_v29  ;;  %v2504_v37 = vadd.f32 %v2502_v9, %v2442_v52  ;;  %v2505_v26 = vadd.f32 %v2503_v51, %v2443_v8  ;;  %v3052_v52 = vld [vmem:[%s3441_s23 + $0x88] sm:$0xff]  ;;  %v3053_v8 = vld [vmem:[%s3441_s23 + $0x90] sm:$0xff]  ;;  %v3054_v9 = vld [vmem:[%s3441_s23 + $0x98] sm:$0xff] }
 0x28c   : > { %v2238_v38 = vpop.f32.mrf.mxu1 }
 0x28d   : > { %v2383_v55 = vsub.f32 %v2238_v38, %v3045_v58  ;;  %v2446_v4 = vmul.f32 %v2382_v33, %v2382_v33  ;;  %v2506_v20 = vadd.f32 %v2504_v37, %v2444_v36  ;;  %v2507_v27 = vadd.f32 %v2505_v26, %v2445_v14 }
 0x28e   : > { %v4151_v17 = vpop.f32.mrf.mxu1 }
 0x28f   : > { %v2384_v11 = vsub.f32 %v4151_v17, %v3046_v22  ;;  %v2447_v19 = vmul.f32 %v2383_v55, %v2383_v55  ;;  %v3049_v17 = vld [vmem:[%s3441_s23 + $0x70] sm:$0xff]  ;;  %v2508_v29 = vadd.f32 %v2506_v20, %v2446_v4  ;;  %v3059_v20 = vld [vmem:[%s3441_s23 + $0xc0] sm:$0xff] }
 0x291   : > { %v2448_v21 = vmul.f32 %v2384_v11, %v2384_v11  ;;  %v2509_v33 = vadd.f32 %v2507_v27, %v2447_v19  ;;  %v3055_v11 = vld [vmem:[%s3441_s23 + $0xa0] sm:$0xff]  ;;  %v3058_v19 = vld [vmem:[%s3441_s23 + $0xb8] sm:$0xff] }
 0x292   : > { %v4153_v60 = vpop.f32.mrf.mxu1 }
 0x293   : > { %v2385_v16 = vsub.f32 %v4153_v60, %v3047_v15  ;;  %v2510_v58 = vadd.f32 %v2508_v29, %v2448_v21  ;;  %v3056_v15 = vld [vmem:[%s3441_s23 + $0xa8] sm:$0xff] }
 0x294   : > { %v4155_v39 = vpop.f32.mrf.mxu1 }
 0x295   : > { %v2386_v38 = vsub.f32 %v4155_v39, %v3048_v32  ;;  %v2449_v28 = vmul.f32 %v2385_v16, %v2385_v16  ;;  %v3057_v32 = vld [vmem:[%s3441_s23 + $0xb0] sm:$0xff] }
 0x296   : > { %v4157_v40 = vpop.f32.mrf.mxu1 }
 0x297   : > { %v2387_v25 = vsub.f32 %v4157_v40, %v3049_v17  ;;  %v2450_v30 = vmul.f32 %v2386_v38, %v2386_v38  ;;  %v2511_v36 = vadd.f32 %v2509_v33, %v2449_v28 }
 0x298   : > { %v4159_v57 = vpop.f32.mrf.mxu1 }
 0x299   : > { %v2388_v60 = vsub.f32 %v4159_v57, %v3050_v23  ;;  %v2451_v34 = vmul.f32 %v2387_v25, %v2387_v25  ;;  %v2512_v51 = vadd.f32 %v2510_v58, %v2450_v30 }
 0x29b   : > { %v2452_v55 = vmul.f32 %v2388_v60, %v2388_v60  ;;  %v2513_v37 = vadd.f32 %v2511_v36, %v2451_v34  ;;  %v3060_v60 = vld [vmem:[%s3441_s23 + $0xc8] sm:$0xff] }
 0x29d   : > { %v2514_v38 = vadd.f32 %v2512_v51, %v2452_v55  ;;  %v3064_v55 = vld [vmem:[%s3441_s23 + $0xe8] sm:$0xff]  ;;  %v3066_v51 = vld [vmem:[%s3441_s23 + $0xf8] sm:$0xff] }
 0x2a0   : > { %v4161_v2 = vpop.f32.mrf.mxu1 }
 0x2a1   : > { %v2389_v39 = vsub.f32 %v4161_v2, %v3051_v41 }
 0x2a2   : > { %v4163_v42 = vpop.f32.mrf.mxu1 }
 0x2a3   : > { %v2390_v31 = vsub.f32 %v4163_v42, %v3052_v52  ;;  %v2453_v22 = vmul.f32 %v2389_v39, %v2389_v39  ;;  %v3061_v39 = vld [vmem:[%s3441_s23 + $0xd0] sm:$0xff]  ;;  %v3062_v52 = vld [vmem:[%s3441_s23 + $0xd8] sm:$0xff] }
 0x2a4   : > { %v4165_v43 = vpop.f32.mrf.mxu1 }
 0x2a5   : > { %v2391_v57 = vsub.f32 %v4165_v43, %v3053_v8  ;;  %v2454_v14 = vmul.f32 %v2390_v31, %v2390_v31  ;;  %v2515_v17 = vadd.f32 %v2513_v37, %v2453_v22 }
 0x2a6   : > { %v4167_v62 = vpop.f32.mrf.mxu1 }
 0x2a7   : > { %v2392_v2 = vsub.f32 %v4167_v62, %v3054_v9  ;;  %v2455_v4 = vmul.f32 %v2391_v57, %v2391_v57  ;;  %v2516_v21 = vadd.f32 %v2514_v38, %v2454_v14 }
 0x2a9   : > { %v2456_v26 = vmul.f32 %v2392_v2, %v2392_v2 }
 0x2aa   : > { %v4169_v45 = vpop.f32.mrf.mxu1 }
 0x2ab   : > { %v2393_v42 = vsub.f32 %v4169_v45, %v3055_v11  ;;  %v2518_v29 = vadd.f32 %v2516_v21, %v2456_v26 }
 0x2ac   : > { %v4171_v46 = vpop.f32.mrf.mxu1 }
 0x2ad   : > { %v2394_v16 = vsub.f32 %v4171_v46, %v3056_v15  ;;  %v2457_v25 = vmul.f32 %v2393_v42, %v2393_v42 }
 0x2ae   : > { %v4173_v47 = vpop.f32.mrf.mxu1 }
 0x2af   : > { %v2395_v62 = vsub.f32 %v4173_v47, %v3057_v32  ;;  %v2458_v23 = vmul.f32 %v2394_v16, %v2394_v16  ;;  %v2517_v47 = vadd.f32 %v2515_v17, %v2455_v4 }
 0x2b0   : > { %v4175_v48 = vpop.f32.mrf.mxu1 }
 0x2b1   : > { %v2396_v45 = vsub.f32 %v4175_v48, %v3058_v19  ;;  %v2459_v41 = vmul.f32 %v2395_v62, %v2395_v62  ;;  %v2519_v33 = vadd.f32 %v2517_v47, %v2457_v25  ;;  %v2520_v57 = vadd.f32 %v2518_v29, %v2458_v23  ;;  %v3068_v62 = vld [vmem:[%s3441_s23 + $0x108] sm:$0xff]  ;;  %v3069_v19 = vld [vmem:[%s3441_s23 + $0x110] sm:$0xff]  ;;  %v3070_v25 = vld [vmem:[%s3441_s23 + $0x118] sm:$0xff] }
 0x2b2   : > { %v3071_v23 = vld [vmem:[%s3441_s23 + $0x120] sm:$0xff]  ;;  %v3072_v47 = vld [vmem:[%s3441_s23 + $0x128] sm:$0xff] }
 0x2b3   : > { %v2460_v30 = vmul.f32 %v2396_v45, %v2396_v45  ;;  %v2521_v2 = vadd.f32 %v2519_v33, %v2459_v41 }
 0x2b5   : > { %v2522_v11 = vadd.f32 %v2520_v57, %v2460_v30 }
 0x2b8   : > { %v4177_v49 = vpop.f32.mrf.mxu1 }
 0x2b9   : > { %v2397_v46 = vsub.f32 %v4177_v49, %v3059_v20 }
 0x2ba   : > { %v4179_v50 = vpop.f32.mrf.mxu1 }
 0x2bb   : > { %v2398_v27 = vsub.f32 %v4179_v50, %v3060_v60  ;;  %v2461_v34 = vmul.f32 %v2397_v46, %v2397_v46  ;;  %v3063_v50 = vld [vmem:[%s3441_s23 + $0xe0] sm:$0xff] }
 0x2bc   : > { %v4181_v54 = vpop.f32.mrf.mxu1 }
 0x2bd   : > { %v2399_v48 = vsub.f32 %v4181_v54, %v3061_v39  ;;  %v2462_v58 = vmul.f32 %v2398_v27, %v2398_v27  ;;  %v2523_v15 = vadd.f32 %v2521_v2, %v2461_v34 }
 0x2be   : > { %v4183_v53 = vpop.f32.mrf.mxu1 }
 0x2bf   : > { %v2400_v49 = vsub.f32 %v4183_v53, %v3062_v52  ;;  %v2463_v36 = vmul.f32 %v2399_v48, %v2399_v48  ;;  %v3065_v53 = vld [vmem:[%s3441_s23 + $0xf0] sm:$0xff]  ;;  %v2524_v4 = vadd.f32 %v2522_v11, %v2462_v58  ;;  %v3076_v58 = vld [vmem:[%s3441_s23 + $0x148] sm:$0xff]  ;;  %v3078_v11 = vld [vmem:[%s3441_s23 + $0x158] sm:$0xff] }
 0x2c1   : > { %v2464_v42 = vmul.f32 %v2400_v49, %v2400_v49  ;;  %v2525_v38 = vadd.f32 %v2523_v15, %v2463_v36  ;;  %v3074_v49 = vld [vmem:[%s3441_s23 + $0x138] sm:$0xff]  ;;  %v3077_v36 = vld [vmem:[%s3441_s23 + $0x150] sm:$0xff] }
 0x2c2   : > { %v4185_v56 = vpop.f32.mrf.mxu1 }
 0x2c3   : > { %v2401_v8 = vsub.f32 %v4185_v56, %v3063_v50  ;;  %v2526_v45 = vadd.f32 %v2524_v4, %v2464_v42  ;;  %v3075_v50 = vld [vmem:[%s3441_s23 + $0x140] sm:$0xff] }
 0x2c4   : > { %v4187_v59 = vpop.f32.mrf.mxu1 }
 0x2c5   : > { %v2402_v54 = vsub.f32 %v4187_v59, %v3064_v55  ;;  %v2465_v16 = vmul.f32 %v2401_v8, %v2401_v8  ;;  %v3067_v59 = vld [vmem:[%s3441_s23 + $0x100] sm:$0xff] }
 0x2c6   : > { %v4189_v13 = vpop.f32.mrf.mxu1 }
 0x2c7   : > { %v2403_v22 = vsub.f32 %v4189_v13, %v3065_v53  ;;  %v2466_v32 = vmul.f32 %v2402_v54, %v2402_v54 }
 0x2c8   : > { %v4191_v61 = vpop.f32.mrf.mxu1 }
 0x2c9   : > { %v2404_v56 = vsub.f32 %v4191_v61, %v3066_v51  ;;  %v2467_v26 = vmul.f32 %v2403_v22, %v2403_v22  ;;  %v2528_v60 = vadd.f32 %v2526_v45, %v2466_v32  ;;  %v3083_v45 = vld [vmem:[%s3441_s23 + $0x180] sm:$0xff] }
 0x2cb   : > { %v2468_v17 = vmul.f32 %v2404_v56, %v2404_v56  ;;  %v3079_v56 = vld [vmem:[%s3441_s23 + $0x160] sm:$0xff] }
 0x2cd   : > { %v2530_v30 = vadd.f32 %v2528_v60, %v2468_v17 }
 0x2d0   : > { %v4193_v63 = vpop.f32.mrf.mxu1 }
 0x2d1   : > { %v2405_v37 = vsub.f32 %v4193_v63, %v3067_v59  ;;  %v2527_v63 = vadd.f32 %v2525_v38, %v2465_v16  ;;  %v3080_v59 = vld [vmem:[%s3441_s23 + $0x168] sm:$0xff] }
 0x2d2   : > { %v4195_v35 = vpop.f32.mrf.mxu1 }
 0x2d3   : > { %v2406_v13 = vsub.f32 %v4195_v35, %v3068_v62  ;;  %v2469_v21 = vmul.f32 %v2405_v37, %v2405_v37  ;;  %v2529_v39 = vadd.f32 %v2527_v63, %v2467_v26  ;;  %v3081_v62 = vld [vmem:[%s3441_s23 + $0x170] sm:$0xff]  ;;  %v3082_v26 = vld [vmem:[%s3441_s23 + $0x178] sm:$0xff] }
 0x2d4   : > { %v4197_v3 = vpop.f32.mrf.mxu1 }
 0x2d5   : > { %v2407_v61 = vsub.f32 %v4197_v3, %v3069_v19  ;;  %v2470_v27 = vmul.f32 %v2406_v13, %v2406_v13  ;;  %v2531_v33 = vadd.f32 %v2529_v39, %v2469_v21 }
 0x2d6   : > { %v4199_v44 = vpop.f32.mrf.mxu1 }
 0x2d7   : > { %v2408_v20 = vsub.f32 %v4199_v44, %v3070_v25  ;;  %v2471_v48 = vmul.f32 %v2407_v61, %v2407_v61  ;;  %v3073_v44 = vld [vmem:[%s3441_s23 + $0x130] sm:$0xff]  ;;  %v2532_v8 = vadd.f32 %v2530_v30, %v2470_v27 }
 0x2d9   : > { %v2472_v52 = vmul.f32 %v2408_v20, %v2408_v20  ;;  %v2533_v54 = vadd.f32 %v2531_v33, %v2471_v48  ;;  %v3084_v20 = vld [vmem:[%s3441_s23 + $0x188] sm:$0xff] }
 0x2da   : > { %v4201_v5 = vpop.f32.mrf.mxu1 }
 0x2db   : > { %v2409_v35 = vsub.f32 %v4201_v5, %v3071_v23 }
 0x2dc   : > { %v4203_v6 = vpop.f32.mrf.mxu1 }
 0x2dd   : > { %v2410_v3 = vsub.f32 %v4203_v6, %v3072_v47  ;;  %v2473_v34 = vmul.f32 %v2409_v35, %v2409_v35  ;;  %v3085_v35 = vld [vmem:[%s3441_s23 + $0x190] sm:$0xff]  ;;  %v3086_v47 = vld [vmem:[%s3441_s23 + $0x198] sm:$0xff] }
 0x2de   : > { %v4205_v7 = vpop.f32.mrf.mxu1 }
 0x2df   : > { %v2411_v29 = vsub.f32 %v4205_v7, %v3073_v44  ;;  %v2474_v57 = vmul.f32 %v2410_v3, %v2410_v3  ;;  %v3087_v44 = vld [vmem:[%s3441_s23 + $0x1a0] sm:$0xff] }
 0x2e0   : > { %v4207_v1 = vpop.f32.mrf.mxu1 }
 0x2e1   : > { %v2412_v5 = vsub.f32 %v4207_v1, %v3074_v49  ;;  %v2475_v2 = vmul.f32 %v2411_v29, %v2411_v29  ;;  %v2534_v1 = vadd.f32 %v2532_v8, %v2472_v52  ;;  %v3088_v52 = vld [vmem:[%s3441_s23 + $0x1a8] sm:$0xff]  ;;  %v3090_v8 = vld [vmem:[%s3441_s23 + $0x1b8] sm:$0xff] }
 0x2e3   : > { %v2476_v22 = vmul.f32 %v2412_v5, %v2412_v5 }
 0x2e8   : > { %v4211_v10 = vpop.f32.mrf.mxu1 }
 0x2e9   : > { %v2413_v6 = vsub.f32 %v4211_v10, %v3075_v50  ;;  %v2535_v10 = vadd.f32 %v2533_v54, %v2473_v34  ;;  %v3089_v34 = vld [vmem:[%s3441_s23 + $0x1b0] sm:$0xff] }
 0x2ea   : > { %v4217_v0 = vpop.f32.mrf.mxu1 }
 0x2eb   : > { %v2414_v55 = vsub.f32 %v4217_v0, %v3076_v58  ;;  %v2477_v51 = vmul.f32 %v2413_v6, %v2413_v6  ;;  %v2536_v0 = vadd.f32 %v2534_v1, %v2474_v57  ;;  %v2537_v4 = vadd.f32 %v2535_v10, %v2475_v2  ;;  %v3093_v10 = vld [vmem:[%s3441_s23 + $0x1d0] sm:$0xff] }
 0x2ec   : > { %v4221_v24 = vpop.f32.mrf.mxu1 }
 0x2ed   : > { %v2415_v53 = vsub.f32 %v4221_v24, %v3077_v36  ;;  %v2478_v16 = vmul.f32 %v2414_v55, %v2414_v55 }
 0x2ee   : > { %v4228_v12 = vpop.f32.mrf.mxu1 }
 0x2ef   : > { %v2416_v42 = vsub.f32 %v4228_v12, %v3078_v11  ;;  %v2479_v32 = vmul.f32 %v2415_v53, %v2415_v53  ;;  %v2538_v12 = vadd.f32 %v2536_v0, %v2476_v22  ;;  %v3092_v11 = vld [vmem:[%s3441_s23 + $0x1c8] sm:$0xff] }
 0x2f1   : > { %v2480_v38 = vmul.f32 %v2416_v42, %v2416_v42 }
 0x2f2   : > { %v4234_v18 = vpop.f32.mrf.mxu1 }
 0x2f3   : > { %v2417_v15 = vsub.f32 %v4234_v18, %v3079_v56  ;;  %v2539_v18 = vadd.f32 %v2537_v4, %v2477_v51 }
 0x2f4   : > { %v4244_v40 = vpop.f32.mrf.mxu1 }
 0x2f5   : > { %v2418_v37 = vsub.f32 %v4244_v40, %v3080_v59  ;;  %v2481_v61 = vmul.f32 %v2417_v15, %v2417_v15  ;;  %v2540_v40 = vadd.f32 %v2538_v12, %v2478_v16  ;;  %v3094_v59 = vld [vmem:[%s3441_s23 + $0x1d8] sm:$0xff]  ;;  %v3095_v12 = vld [vmem:[%s3441_s23 + $0x1e0] sm:$0xff] }
 0x2f6   : > { %v4254_v43 = vpop.f32.mrf.mxu1 }
 0x2f7   : > { %v2419_v13 = vsub.f32 %v4254_v43, %v3081_v62  ;;  %v2482_v25 = vmul.f32 %v2418_v37, %v2418_v37  ;;  %v2541_v43 = vadd.f32 %v2539_v18, %v2479_v32 }
 0x2f8   : > { %v4264_v28 = vpop.f32.mrf.mxu1 }
 0x2f9   : > { %v2420_v19 = vsub.f32 %v4264_v28, %v3082_v26  ;;  %v2483_v23 = vmul.f32 %v2419_v13, %v2419_v13  ;;  %v2542_v28 = vadd.f32 %v2540_v40, %v2480_v38  ;;  %v2543_v39 = vadd.f32 %v2541_v43, %v2481_v61  ;;  %v3097_v43 = vld [vmem:[%s3441_s23 + $0x1f0] sm:$0xff] }
 0x2fb   : > { %v2484_v27 = vmul.f32 %v2420_v19, %v2420_v19  ;;  %v2544_v29 = vadd.f32 %v2542_v28, %v2482_v25 }
 0x2fd   : > { %v2546_v6 = vadd.f32 %v2544_v29, %v2484_v27 }
 0x300   : > { %v4270_v31 = vpop.f32.mrf.mxu1 }
 0x301   : > { %v2421_v17 = vsub.f32 %v4270_v31, %v3083_v45 }
 0x302   : > { %v4276_v9 = vpop.f32.mrf.mxu1 }
 0x303   : > { %v2422_v63 = vsub.f32 %v4276_v9, %v3084_v20  ;;  %v2485_v48 = vmul.f32 %v2421_v17, %v2421_v17  ;;  %v3096_v17 = vld [vmem:[%s3441_s23 + $0x1e8] sm:$0xff] }
 0x304   : > { %v4282_v14 = vpop.f32.mrf.mxu1 }
 0x305   : > { %v2423_v60 = vsub.f32 %v4282_v14, %v3085_v35  ;;  %v2486_v30 = vmul.f32 %v2422_v63, %v2422_v63  ;;  %v2545_v14 = vadd.f32 %v2543_v39, %v2483_v23 }
 0x306   : > { %v4292_v46 = vpop.f32.mrf.mxu1 }
 0x307   : > { %v2424_v3 = vsub.f32 %v4292_v46, %v3086_v47  ;;  %v2487_v33 = vmul.f32 %v2423_v60, %v2423_v60  ;;  %v2547_v55 = vadd.f32 %v2545_v14, %v2485_v48  ;;  %v2548_v36 = vadd.f32 %v2546_v6, %v2486_v30  ;;  %v3098_v47 = vld [vmem:[%s3441_s23 + $0x1f8] sm:$0xff] }
 0x309   : > { %v2488_v46 = vmul.f32 %v2424_v3, %v2424_v3  ;;  %v2549_v1 = vadd.f32 %v2547_v55, %v2487_v33 }
 0x30a   : > { %v4298_v41 = vpop.f32.mrf.mxu1 }
 0x30b   : > { %v2425_v9 = vsub.f32 %v4298_v41, %v3087_v44  ;;  %v3091_v41 = vld [vmem:[%s3441_s23 + $0x1c0] sm:$0xff]  ;;  %v2550_v56 = vadd.f32 %v2548_v36, %v2488_v46  ;;  %s3159_s23 = sshll.u32 %s3233_s28, 4  ;;  %s3160_s23 = int_to_ptr.vmem [resolvable:$false] %s3159_s23 }
 0x30c   : > { %v2346_v7 = vpop.f32.mrf.mxu1  ;;  %s3161_s10 = scalar_lea.vmem %s3160_s23, 512  ;;  %p3162_p0 = scmp.lt.s32.totalorder %s2581_s15, %s3160_s23 }
 0x30d   : > { %v2426_v49 = vsub.f32 %v2346_v7, %v3088_v52  ;;  %v2489_v54 = vmul.f32 %v2425_v9, %v2425_v9  ;;  %p3163_p2 = scmp.lt.s32.totalorder %s3161_s10, %s3155_s19 }
 0x30e   : > { %v2348_v24 = vpop.f32.mrf.mxu1 }
 0x30f   : > { %v2427_v50 = vsub.f32 %v2348_v24, %v3089_v34  ;;  %v2490_v53 = vmul.f32 %v2426_v49, %v2426_v49  ;;  %v2551_v0 = vadd.f32 %v2549_v1, %v2489_v54  ;;  %p3164_p4 = por %p3163_p2, %p3162_p0 }
 0x310   : > { %v2350_v21 = vpop.f32.mrf.mxu1 }
 0x311   : > { %v2428_v57 = vsub.f32 %v2350_v21, %v3090_v8  ;;  %v2491_v22 = vmul.f32 %v2427_v50, %v2427_v50  ;;  %v2552_v24 = vadd.f32 %v2550_v56, %v2490_v53  ;;  %p3165_p9 = pnand %p3164_p4, %p3158_p10 }
 0x313   : > { %v2492_v15 = vmul.f32 %v2428_v57, %v2428_v57  ;;  %v2553_v32 = vadd.f32 %v2551_v0, %v2491_v22 }
 0x315   : > { %v2554_v26 = vadd.f32 %v2552_v24, %v2492_v15 }
 0x318   : > { %v2354_v31 = vpop.f32.mrf.mxu1 }
 0x319   : > { %v2429_v2 = vsub.f32 %v2354_v31, %v3091_v41 }
 0x31a   : > { %v2356_v5 = vpop.f32.mrf.mxu1 }
 0x31b   : > { %v2430_v42 = vsub.f32 %v2356_v5, %v3092_v11  ;;  %v2493_v16 = vmul.f32 %v2429_v2, %v2429_v2 }
 0x31c   : > { %v2358_v58 = vpop.f32.mrf.mxu1 }
 0x31d   : > { %v2431_v51 = vsub.f32 %v2358_v58, %v3093_v10  ;;  %v2494_v62 = vmul.f32 %v2430_v42, %v2430_v42  ;;  %v2555_v18 = vadd.f32 %v2553_v32, %v2493_v16 }
 0x31e   : > { %v2360_v7 = vpop.f32.mrf.mxu1 }
 0x31f   : > { %v2432_v37 = vsub.f32 %v2360_v7, %v3094_v59  ;;  %v2495_v13 = vmul.f32 %v2431_v51, %v2431_v51  ;;  %v2556_v20 = vadd.f32 %v2554_v26, %v2494_v62 }
 0x321   : > { %v2496_v61 = vmul.f32 %v2432_v37, %v2432_v37  ;;  %v2557_v63 = vadd.f32 %v2555_v18, %v2495_v13 }
 0x322   : > { %v2364_v4 = vpop.f32.mrf.mxu1 }
 0x323   : > { %v2433_v38 = vsub.f32 %v2364_v4, %v3095_v12  ;;  %v2558_v60 = vadd.f32 %v2556_v20, %v2496_v61 }
 0x324   : > { %v2366_v19 = vpop.f32.mrf.mxu1 }
 0x325   : > { %v2497_v45 = vmul.f32 %v2433_v38, %v2433_v38  ;;  %v2434_v40 = vsub.f32 %v2366_v19, %v3096_v17 }
 0x326   : > { %v2368_v25 = vpop.f32.mrf.mxu1 }
 0x327   : > { %v2498_v21 = vmul.f32 %v2434_v40, %v2434_v40  ;;  %v2435_v23 = vsub.f32 %v2368_v25, %v3097_v43  ;;  %v2559_v28 = vadd.f32 %v2557_v63, %v2497_v45 }
 0x328   : > { %v2370_v35 = vpop.f32.mrf.mxu1 }
 0x329   : > { %v2499_v27 = vmul.f32 %v2435_v23, %v2435_v23  ;;  %v2436_v3 = vsub.f32 %v2370_v35, %v3098_v47  ;;  %v2560_v31 = vadd.f32 %v2558_v60, %v2498_v21 }
 0x32b   : > { %v2561_v39 = vadd.f32 %v2559_v28, %v2499_v27  ;;  %v2500_v48 = vmul.f32 %v2436_v3, %v2436_v3 }
 0x32d   : > { %2563 = vst [vmem:[%s354_s12] sm:$0xff] %v2561_v39  ;;  %v2562_v44 = vadd.f32 %v2560_v31, %v2500_v48 }
 0x32f   : > { %2564 = vst [vmem:[%s354_s12 + $0x8] sm:$0xff] %v2562_v44 }
 0x330   : > { %3168 = shalt.err (!%p3165_p9)
}
 0x331   : > { %s3169_s21 = scalar_lea.hbm %s2578_s22, 256  ;;  %s3173_s16 = scalar_lea.hbm %s4384_s7, 512 }
 0x332   : > { %p3170_p11 = scmp.ne.s32.totalorder %s2578_s22, %s3169_s21  ;;  %p3174_p8 = scmp.lt.s32.totalorder %s2578_s22, %s4384_s7 }
 0x333   : > { %p3175_p6 = scmp.lt.s32.totalorder %s3173_s16, %s3169_s21 }
 0x334   : > { %p3171_p3 = pnand %p3170_p11, %p4403_p12 }
 0x335   : > { %p3176_p13 = por %p3175_p6, %p3174_p8 }
 0x336   : > { %p3172_p5 = pneg %p3171_p3 }
 0x338   : > { %p3177_p1 = pnand %p3176_p13, %p3172_p5 }
 0x33a   : > { %3180 = shalt.err (!%p3177_p1)
}
 0x33b   : > { %2780 = dma.vmem_to_hbm [thread:$0]  (%p4403_p12), %s2581_s15, 256, %s2578_s22, %s2566_s17  }
 0x33c PF: > { %s2592_s20 = sand.u32 1, %s3211_s24   ;;  %p4404_p7 = scmp.ne.s32.totalorder %s4395_s14, 0 }
 0x33d   : > { %p4405_p10 = scmp.ge.s32.totalorder %s3223_s27, 2  ;;  %s2593_s12 = scalar_lea.sflag [#allocation4], %s2592_s20 }
 0x33f   : > { %p2790_p0 = pnand %p4405_p10, %p4404_p7 }
 0x341   : > { %p2791_p2 = pneg %p2790_p0 }
 0x343   : > { %3206 = dma.done.wait (%p2791_p2), %s2593_s12, 256  }
 0x344   : > { %3208 = vsyncadd (%p2791_p2), %s2593_s12, 4294967040  ;;  %s4406_s8 = sld [smem:[#allocation11_spill]]  ;;  %p23_p4 = scmp.ge.s32.totalorder %s3299_s30, 4  }
 0x345   : > { %s4407_s24 = smov %s3215_s25  ;;  %s4408_s25 = smov %s3219_s26 }
 0x346   : > { %s4410_s27 = smov %s3299_s30  ;;  %25 = sbr.rel (!%p23_p4) target bundleno = 9 (0x9), region = 109 }
 0x34a   : > { %s4409_s26 = smov %s4406_s8 }
 0x34b   :  { %2598 = vsyncpa [#allocation3], 1 }
 0x34c   :  { %2600 = vsyncpa [#allocation3 + $0x1], 1 }
 0x34d   :  { %2601 = vsyncpa [#allocation6], 1 }
 0x34e   :  { %2603 = vsyncpa [#allocation6 + $0x1], 1 }
 0x34f   :  { %2604 = vsyncpa [#allocation4], 1 }
 0x350   :  { %2606 = vsyncpa [#allocation4 + $0x1], 1 }

</bundles_post_ra>
